<compile_context>
chip_gen: v7x
topology: tpu7x:2x2x1
jax: 0.10.0
libtpu: 0.0.40
codegen_flags: <defaults>
</compile_context>

<pallas_src>
import functools

import jax
import jax.numpy as jnp
from jax.experimental import pallas as pl
from jax.experimental.pallas import tpu as pltpu


# Lane-dense channel padding: every channel dim in this toy model is <= 96,
# so everything is padded to one full 128-lane vreg width.
CPAD = 128


# ----------------------------------------------------------------------------
# Helpers
# ----------------------------------------------------------------------------
def _pad_wb(w, b):
    """Zero-pad (cin,cout) weight / (cout,) bias to CPAD; weight -> bf16."""
    cin, cout = w.shape
    wp = jnp.zeros((CPAD, CPAD), jnp.float32).at[:cin, :cout].set(w)
    bp = jnp.zeros((1, CPAD), jnp.float32).at[0, :cout].set(b)
    return wp.astype(jnp.bfloat16), bp


def _pool_matrix(H, W):
    """(H//2 * W//2, H*W) matrix implementing a 2x2 average pool on a
    row-major flattened (H*W, C) activation slab.  Entries are exactly 0.25
    (representable in bf16)."""
    H2, W2 = H // 2, W // 2
    out_idx = jnp.arange(H2 * W2)
    h2, w2 = out_idx // W2, out_idx % W2
    base = (2 * h2 * W + 2 * w2)[:, None]
    src = base + jnp.array([0, 1, W, W + 1])[None, :]        # 4 source rows
    P = jnp.zeros((H2 * W2, H * W), jnp.float32)
    P = P.at[out_idx[:, None], src].set(0.25)
    return P.astype(jnp.bfloat16)


# ----------------------------------------------------------------------------
# Single fused whole-network kernel.
#   x:      (1, HW0, CPAD)   bf16   (one image's flattened slab)
#   w:      (L, CPAD, CPAD)  bf16   (all layer weights, plan order)
#   b:      (L, 1, CPAD)     f32
#   pools:  n_pools 2D bf16 averaging matrices (grid-invariant)
#   o:      (1, 1, CPAD)     f32    (per-image global-average-pooled features)
# `ops` is a static python tuple: ("conv", relu) entries consume the next
# stacked layer; ("pool",) entries consume the next pooling matrix.
# ----------------------------------------------------------------------------
def _snnet_kernel(ops, n_pools, x_ref, w_ref, b_ref, *rest):
    pool_refs = rest[:n_pools]
    o_ref = rest[n_pools]

    a = x_ref[0].astype(jnp.float32)          # (HW, CPAD) f32 working slab
    li = 0                                    # layer index (static)
    pi = 0                                    # pool index  (static)
    for op in ops:                            # static unroll over the whole net
        if op[0] == "pool":
            # 2x2 avg-pool as MXU matmul: (HW/4, HW) @ (HW, CPAD)
            a = jnp.dot(pool_refs[pi][...], a.astype(jnp.bfloat16),
                        preferred_element_type=jnp.float32)
            pi += 1
        else:                                 # ("conv", relu)
            a = jnp.dot(a.astype(jnp.bfloat16), w_ref[li],
                        preferred_element_type=jnp.float32) + b_ref[li]
            if op[1]:
                a = jnp.maximum(a, 0.0)
            li += 1
    # Global average pool (f32 cross-sublane reduce), lane-dense 128-wide store.
    o_ref[0] = jnp.mean(a, axis=0, keepdims=True)


def run_plan_fused(x3d, B, H, W, plan):
    """Execute a whole plan (chains + pools) in one pallas_call.

    x3d:  (B, H*W, CPAD) bf16 input slab.
    plan: list of ("chain", [(w_bf16, b_f32, relu), ...]) / ("pool",) entries.
    Returns (B, CPAD) f32 global-average-pooled features.
    """
    ops, layers, pool_mats = [], [], []
    h, w = H, W
    for entry in plan:
        if entry[0] == "chain":
            for (wt, bs, relu) in entry[1]:
                layers.append((wt, bs))
                ops.append(("conv", bool(relu)))
        else:                                  # ("pool",)
            pool_mats.append(_pool_matrix(h, w))
            ops.append(("pool",))
            h //= 2
            w //= 2

    L = len(layers)
    w_stack = jnp.stack([wt for wt, _ in layers])       # (L, CPAD, CPAD) bf16
    b_stack = jnp.stack([bs for _, bs in layers])       # (L, 1, CPAD)    f32
    n_pools = len(pool_mats)
    HW0 = H * W

    kernel = functools.partial(_snnet_kernel, tuple(ops), n_pools)

    in_specs = [
        pl.BlockSpec((1, HW0, CPAD), lambda i: (i, 0, 0)),
        # Grid-invariant blocks below: Pallas DMAs them once (block index never
        # changes).  At production widths these should be single-buffered /
        # layer-pipelined instead of stacked (see TODO at top of file).
        pl.BlockSpec((L, CPAD, CPAD), lambda i: (0, 0, 0)),
        pl.BlockSpec((L, 1, CPAD), lambda i: (0, 0, 0)),
    ]
    for pm in pool_mats:
        in_specs.append(pl.BlockSpec(pm.shape, lambda i: (0, 0)))

    feat = pl.pallas_call(
        kernel,
        out_shape=jax.ShapeDtypeStruct((B, 1, CPAD), jnp.float32),
        grid=(B,),                                       # one image per step
        in_specs=in_specs,
        out_specs=pl.BlockSpec((1, 1, CPAD), lambda i: (i, 0, 0)),
        compiler_params=pltpu.CompilerParams(
            dimension_semantics=("parallel",)),          # v7x: 1 image per TC
    )(x3d, w_stack, b_stack, *pool_mats)
    return feat.reshape(B, CPAD)


# ----------------------------------------------------------------------------
# Stitch configuration generation (pure python glue — exact port of reference)
# ----------------------------------------------------------------------------
def paired_stitching(depth=12, kernel_size=2, stride=1):
    blk_id = list(range(depth))
    i = 0
    stitch_cfgs = []
    stitch_id = -1
    stitching_layers_mappings = []
    while i < depth:
        ids = blk_id[i:i + kernel_size]
        has_new_stitches = False
        for j in ids:
            for k in ids:
                if (j, k) not in stitch_cfgs:
                    if k == 0:
                        continue
                    if j >= k:
                        continue
                    has_new_stitches = True
                    stitch_cfgs.append((j, k))
                    stitching_layers_mappings.append(stitch_id + 1)
        if has_new_stitches:
            stitch_id += 1
        i += stride
    num_stitches = stitch_id + 1
    return stitch_cfgs, stitching_layers_mappings, num_stitches


def unpaired_stitching(front_depth=12, end_depth=24):
    num_stitches = front_depth
    # nearest-neighbour interpolation of block ids (torch F.interpolate default)
    end_mapping_ids = [int(j * front_depth // end_depth) for j in range(end_depth)]
    front_mapping_ids = list(range(front_depth))
    stitch_cfgs = []
    for idx in front_mapping_ids:
        for i, e_idx in enumerate(end_mapping_ids):
            if idx != e_idx or idx >= i:
                continue
            else:
                if i == 0:
                    continue
                stitch_cfgs.append((idx, i))
    return stitch_cfgs, end_mapping_ids, num_stitches


def get_stitch_configs(depths, stage_id):
    depths = sorted(depths)
    d = depths[0]
    total_configs = []
    total_stitches = []
    for i in range(1, len(depths)):
        next_d = depths[i]
        if next_d == d:
            stitch_cfgs, layers_mappings, num_stitches = paired_stitching(d)
        else:
            stitch_cfgs, layers_mappings, num_stitches = unpaired_stitching(d, next_d)
        comb = (i - 1, i)
        for cfg, layer_mapping_id in zip(stitch_cfgs, layers_mappings):
            total_configs.append({'comb_id': comb, 'stage_id': stage_id,
                                  'stitch_cfgs': [cfg],
                                  'stitch_layers': [layer_mapping_id]})
        total_stitches.append((num_stitches, comb))
        d = next_d
    return total_configs, total_stitches


# ----------------------------------------------------------------------------
# Synthetic anchor model (stem -> 4 stages of 1x1-conv+ReLU blocks -> head)
# exposing the SNNet-required API.  Parameters are stored pre-padded to CPAD.
# The "plan" (chains separated by pools) is consumed by run_plan_fused, which
# turns the whole thing into a single Pallas kernel.
# ----------------------------------------------------------------------------
class Anchor:
    def __init__(self, key, depths, stage_dims, in_chans=4, num_classes=10):
        self.depths = list(depths)
        self.stage_dims = list(stage_dims)
        self.num_classes = num_classes
        assert max(self.stage_dims) <= CPAD and in_chans <= CPAD
        keys = iter(jax.random.split(key, 128))

        def lin(cin, cout):
            k1, k2 = next(keys), next(keys)
            w = jax.random.normal(k1, (cin, cout), jnp.float32) / jnp.sqrt(
                jnp.float32(cin))
            b = 0.01 * jax.random.normal(k2, (cout,), jnp.float32)
            return _pad_wb(w, b)

        self.stem = lin(in_chans, stage_dims[0])
        self.blocks = [[lin(stage_dims[s], stage_dims[s])
                        for _ in range(self.depths[s])] for s in range(4)]
        self.downs = [lin(stage_dims[s], stage_dims[s + 1]) for s in range(3)]

        k1, k2 = next(keys), next(keys)
        hw = jax.random.normal(k1, (stage_dims[3], num_classes),
                               jnp.float32) / jnp.sqrt(jnp.float32(stage_dims[3]))
        hb = 0.01 * jax.random.normal(k2, (num_classes,), jnp.float32)
        self.head_w = jnp.zeros((CPAD, num_classes), jnp.float32).at[
            :stage_dims[3], :].set(hw)
        self.head_b = hb

    # -- plan builders (lists of chains separated by 2x2 pools) --------------
    def full_plan(self):
        plan = []
        cur = [(*self.stem, True)]
        for s in range(4):
            cur += [(*wb, True) for wb in self.blocks[s]]
            plan.append(("chain", cur))
            if s < 3:
                plan.append(("pool",))
                cur = [(*self.downs[s], True)]
        return plan

    def until_plan(self, stage_id, blk_id):
        """stem, full stages < stage_id, then blocks [0 .. blk_id] of stage_id."""
        plan = []
        cur = [(*self.stem, True)]
        for s in range(stage_id):
            cur += [(*wb, True) for wb in self.blocks[s]]
            plan.append(("chain", cur))
            plan.append(("pool",))
            cur = [(*self.downs[s], True)]
        cur += [(*wb, True) for wb in self.blocks[stage_id][:blk_id + 1]]
        plan.append(("chain", cur))
        return plan

    def from_plan(self, stage_id, blk_id, prefix_layers=()):
        """blocks [blk_id ..] of stage_id, remaining stages (head applied separately)."""
        plan = []
        cur = list(prefix_layers) + [(*wb, True)
                                     for wb in self.blocks[stage_id][blk_id:]]
        for s in range(stage_id, 3):
            plan.append(("chain", cur))
            plan.append(("pool",))
            cur = [(*self.downs[s], True)] + [(*wb, True)
                                              for wb in self.blocks[s + 1]]
        plan.append(("chain", cur))
        return plan

    def head(self, feat):
        # Tiny classifier on (B, CPAD) GAP features: plain XLA is faster than a
        # dedicated pallas_call at this size (B x 128 x 10 flops).
        return jnp.dot(feat, self.head_w) + self.head_b     # (B, num_classes)


# ----------------------------------------------------------------------------
# StitchingLayer: 1x1 conv; in the stitched forward its (w, b) are fused into
# the single whole-network kernel (prefix of the end-anchor's first chain).
# ----------------------------------------------------------------------------
class StitchingLayer:
    def __init__(self, key, in_features, out_features, cnn_to_vit=False):
        k1, k2 = jax.random.split(key)
        w = jax.random.normal(k1, (in_features, out_features),
                              jnp.float32) / jnp.sqrt(jnp.float32(in_features))
        b = 0.01 * jax.random.normal(k2, (out_features,), jnp.float32)
        self.w, self.b = _pad_wb(w, b)
        # cnn_to_vit's NCHW->tokens flatten is a layout no-op in the flattened
        # (B*H*W, C) slab representation used by the synthetic anchors.
        self.cnn_to_vit = cnn_to_vit

    def layer(self):
        return (self.w, self.b, False)   # 1x1 conv, no activation


# ----------------------------------------------------------------------------
# SNNet
# ----------------------------------------------------------------------------
class SNNet:
    def __init__(self, anchor_models, cnn_to_vit=False, key=None):
        self.anchors = list(anchor_models)
        self.num_classes = anchor_models[0].num_classes
        stage_depths = [mod.depths for mod in self.anchors]

        key = jax.random.PRNGKey(42) if key is None else key
        key_iter = iter(jax.random.split(key, 256))

        total_configs = []
        self.num_stitches = []
        self.stitch_layers = []
        self.stitching_map_id = {}

        for i in range(len(self.anchors)):
            total_configs.append({'comb_id': [i], 'stitch_cfgs': [],
                                  'stitch_layers': []})

        for i in range(4):
            if i in [0, 3]:
                continue
            cur_depths = [stage_depths[m][i] for m in range(len(self.anchors))]
            stage_configs, stage_stitches = get_stitch_configs(cur_depths, i)
            self.num_stitches.append(stage_stitches)
            total_configs += stage_configs

            stage_stitching_layers = []
            for j, (num_s, comb) in enumerate(stage_stitches):
                front, end = comb
                stage_stitching_layers.append([
                    StitchingLayer(next(key_iter),
                                   self.anchors[front].stage_dims[i],
                                   self.anchors[end].stage_dims[i],
                                   cnn_to_vit=cnn_to_vit)
                    for _ in range(num_s)
                ])
                self.stitching_map_id[f'{i}-{front}-{end}'] = j
            self.stitch_layers.append(stage_stitching_layers)

        self.stitch_configs = {i: cfg for i, cfg in enumerate(total_configs)}
        self.num_configs = len(total_configs)
        self.stitch_config_id = 0

    # TODO(synk): initialize_stitching_weights / ps_inv (torch.linalg.pinv
    # least-squares init from anchor activations) is an init-time routine, not
    # part of the forward pass; stitch weights here are deterministic random.

    def reset_stitch_id(self, stitch_config_id):
        self.stitch_config_id = stitch_config_id

    def forward(self, x_nchw):
        # eval-mode semantics: use self.stitch_config_id (no RNG branch)
        B, Cin, H, W = x_nchw.shape
        x = jnp.transpose(x_nchw, (0, 2, 3, 1))                    # NCHW -> NHWC
        x = jnp.pad(x, ((0, 0), (0, 0), (0, 0), (0, CPAD - Cin)))  # lane-dense
        # bf16 input slab halves the only large HBM read of the fused kernel
        # (the first conv already consumes bf16, so no extra precision loss).
        x3d = x.reshape(B, H * W, CPAD).astype(jnp.bfloat16)
        # TODO(synk): at production resolutions fold this pad/layout into the
        # kernel itself instead of materializing the padded slab in HBM.

        cfg_entry = self.stitch_configs[self.stitch_config_id]
        comb_id = cfg_entry['comb_id']

        if len(comb_id) == 1:
            head_anchor = self.anchors[comb_id[0]]
            plan = head_anchor.full_plan()
        else:
            cfg = cfg_entry['stitch_cfgs'][0]
            stitch_stage_id = cfg_entry['stage_id']
            sl_id = cfg_entry['stitch_layers'][0]
            key = f'{stitch_stage_id}-{comb_id[0]}-{comb_id[1]}'
            stitch_projection_id = self.stitching_map_id[key]

            front = self.anchors[comb_id[0]]
            end = self.anchors[comb_id[1]]
            sl = self.stitch_layers[stitch_stage_id - 1][stitch_projection_id][sl_id]

            # forward_until (front) + stitch conv + forward_from (end), all as
            # one flat plan — chain boundaries are irrelevant since the whole
            # plan is fused into a single pallas_call.
            plan = (front.until_plan(stitch_stage_id, cfg[0])
                    + end.from_plan(stitch_stage_id, cfg[1],
                                    prefix_layers=[sl.layer()]))
            head_anchor = end

        feat = run_plan_fused(x3d, B, H, W, plan)        # (B, CPAD) f32
        return head_anchor.head(feat)

    __call__ = forward


# ----------------------------------------------------------------------------
# main
# ----------------------------------------------------------------------------
if __name__ == "__main__":
    root = jax.random.PRNGKey(0)
    kx, ka0, ka1, ksl = jax.random.split(root, 4)

    # small deterministic input, NCHW like PyTorch
    x = jax.random.normal(kx, (2, 4, 16, 16), jnp.float32)

    # two small anchors; anchor1 is deeper/wider in the stitchable stages
    anchor0 = Anchor(ka0, depths=[2, 2, 2, 2], stage_dims=[8, 16, 32, 64],
                     in_chans=4, num_classes=10)
    anchor1 = Anchor(ka1, depths=[2, 2, 4, 2], stage_dims=[8, 24, 48, 96],
                     in_chans=4, num_classes=10)

    snnet = SNNet([anchor0, anchor1], cnn_to_vit=False, key=ksl)

    # config 0: pure anchor-0 path
    snnet.reset_stitch_id(0)
    out_anchor = snnet(x)
    out_anchor = jax.block_until_ready(out_anchor)

    # a stitched config (stage 2, front anchor0 -> end anchor1)
    stitched_id = next(i for i, c in snnet.stitch_configs.items()
                       if len(c['comb_id']) == 2 and c['stage_id'] == 2)
    snnet.reset_stitch_id(stitched_id)
    out_stitched = snnet(x)
    out_stitched = jax.block_until_ready(out_stitched)

    assert out_anchor.shape == (2, 10)
    assert out_stitched.shape == (2, 10)
    assert bool(jnp.all(jnp.isfinite(out_anchor)))
    assert bool(jnp.all(jnp.isfinite(out_stitched)))
    print("KERNEL_OK")
</pallas_src>

<mosaic_0001>
module attributes {stable_mosaic.version = 11 : i64} {
  func.func @_snnet_kernel(%arg0: i32, %arg1: memref<1x256x128xbf16, #tpu.memory_space<vmem>>, %arg2: memref<12x128x128xbf16, #tpu.memory_space<vmem>>, %arg3: memref<12x1x128xf32, #tpu.memory_space<vmem>>, %arg4: memref<64x256xbf16, #tpu.memory_space<vmem>>, %arg5: memref<16x64xbf16, #tpu.memory_space<vmem>>, %arg6: memref<4x16xbf16, #tpu.memory_space<vmem>>, %arg7: memref<1x1x128xf32, #tpu.memory_space<vmem>>) attributes {dimension_semantics = [#tpu.dimension_semantics<parallel>], iteration_bounds = array<i64: 2>, scalar_prefetch = 0 : i64, scratch_operands = 0 : i64, tpu.core_type = #tpu.core_type<tc>, window_params = [{transform_indices = @transform_0, window_bounds = array<i64: 1, 256, 128>}, {pipeline_mode = #tpu.pipeline_mode<synchronous>, transform_indices = @transform_1, window_bounds = array<i64: 12, 128, 128>}, {pipeline_mode = #tpu.pipeline_mode<synchronous>, transform_indices = @transform_2, window_bounds = array<i64: 12, 1, 128>}, {pipeline_mode = #tpu.pipeline_mode<synchronous>, transform_indices = @transform_3, window_bounds = array<i64: 64, 256>}, {pipeline_mode = #tpu.pipeline_mode<synchronous>, transform_indices = @transform_4, window_bounds = array<i64: 16, 64>}, {pipeline_mode = #tpu.pipeline_mode<synchronous>, transform_indices = @transform_5, window_bounds = array<i64: 4, 16>}, {transform_indices = @transform_6, window_bounds = array<i64: 1, 1, 128>}]} {
    %c0 = arith.constant 0 : index
    %c0_0 = arith.constant 0 : index
    %c0_1 = arith.constant 0 : index
    %0 = vector.load %arg1[%c0, %c0_0, %c0_1] : memref<1x256x128xbf16, #tpu.memory_space<vmem>>, vector<1x256x128xbf16>
    %1 = vector.shape_cast %0 : vector<1x256x128xbf16> to vector<256x128xbf16>
    %2 = arith.extf %1 : vector<256x128xbf16> to vector<256x128xf32>
    %3 = arith.truncf %2 : vector<256x128xf32> to vector<256x128xbf16>
    %c0_2 = arith.constant 0 : index
    %c0_3 = arith.constant 0 : index
    %c0_4 = arith.constant 0 : index
    %4 = vector.load %arg2[%c0_2, %c0_3, %c0_4] : memref<12x128x128xbf16, #tpu.memory_space<vmem>>, vector<1x128x128xbf16>
    %5 = vector.shape_cast %4 : vector<1x128x128xbf16> to vector<128x128xbf16>
    %cst = arith.constant dense<0.000000e+00> : vector<256x128xf32>
    %6 = tpu.matmul %3, %5, %cst {dimension_numbers = #tpu.dot_dimension_numbers<[1], [0], [0], [1], [0, 0, 1, 1], [], []>} : vector<256x128xbf16>, vector<128x128xbf16>, vector<256x128xf32> -> vector<256x128xf32>
    %c0_5 = arith.constant 0 : index
    %c0_6 = arith.constant 0 : index
    %c0_7 = arith.constant 0 : index
    %7 = vector.load %arg3[%c0_5, %c0_6, %c0_7] : memref<12x1x128xf32, #tpu.memory_space<vmem>>, vector<1x1x128xf32>
    %8 = vector.shape_cast %7 : vector<1x1x128xf32> to vector<1x128xf32>
    %9 = vector.broadcast %8 : vector<1x128xf32> to vector<256x128xf32>
    %10 = arith.addf %6, %9 : vector<256x128xf32>
    %cst_8 = arith.constant 0.000000e+00 : f32
    %11 = vector.broadcast %cst_8 : f32 to vector<256x128xf32>
    %12 = arith.maximumf %10, %11 : vector<256x128xf32>
    %13 = arith.truncf %12 : vector<256x128xf32> to vector<256x128xbf16>
    %c1 = arith.constant 1 : index
    %c0_9 = arith.constant 0 : index
    %c0_10 = arith.constant 0 : index
    %14 = vector.load %arg2[%c1, %c0_9, %c0_10] : memref<12x128x128xbf16, #tpu.memory_space<vmem>>, vector<1x128x128xbf16>
    %15 = vector.shape_cast %14 : vector<1x128x128xbf16> to vector<128x128xbf16>
    %cst_11 = arith.constant dense<0.000000e+00> : vector<256x128xf32>
    %16 = tpu.matmul %13, %15, %cst_11 {dimension_numbers = #tpu.dot_dimension_numbers<[1], [0], [0], [1], [0, 0, 1, 1], [], []>} : vector<256x128xbf16>, vector<128x128xbf16>, vector<256x128xf32> -> vector<256x128xf32>
    %c1_12 = arith.constant 1 : index
    %c0_13 = arith.constant 0 : index
    %c0_14 = arith.constant 0 : index
    %17 = vector.load %arg3[%c1_12, %c0_13, %c0_14] : memref<12x1x128xf32, #tpu.memory_space<vmem>>, vector<1x1x128xf32>
    %18 = vector.shape_cast %17 : vector<1x1x128xf32> to vector<1x128xf32>
    %19 = vector.broadcast %18 : vector<1x128xf32> to vector<256x128xf32>
    %20 = arith.addf %16, %19 : vector<256x128xf32>
    %cst_15 = arith.constant 0.000000e+00 : f32
    %21 = vector.broadcast %cst_15 : f32 to vector<256x128xf32>
    %22 = arith.maximumf %20, %21 : vector<256x128xf32>
    %23 = arith.truncf %22 : vector<256x128xf32> to vector<256x128xbf16>
    %c2 = arith.constant 2 : index
    %c0_16 = arith.constant 0 : index
    %c0_17 = arith.constant 0 : index
    %24 = vector.load %arg2[%c2, %c0_16, %c0_17] : memref<12x128x128xbf16, #tpu.memory_space<vmem>>, vector<1x128x128xbf16>
    %25 = vector.shape_cast %24 : vector<1x128x128xbf16> to vector<128x128xbf16>
    %cst_18 = arith.constant dense<0.000000e+00> : vector<256x128xf32>
    %26 = tpu.matmul %23, %25, %cst_18 {dimension_numbers = #tpu.dot_dimension_numbers<[1], [0], [0], [1], [0, 0, 1, 1], [], []>} : vector<256x128xbf16>, vector<128x128xbf16>, vector<256x128xf32> -> vector<256x128xf32>
    %c2_19 = arith.constant 2 : index
    %c0_20 = arith.constant 0 : index
    %c0_21 = arith.constant 0 : index
    %27 = vector.load %arg3[%c2_19, %c0_20, %c0_21] : memref<12x1x128xf32, #tpu.memory_space<vmem>>, vector<1x1x128xf32>
    %28 = vector.shape_cast %27 : vector<1x1x128xf32> to vector<1x128xf32>
    %29 = vector.broadcast %28 : vector<1x128xf32> to vector<256x128xf32>
    %30 = arith.addf %26, %29 : vector<256x128xf32>
    %cst_22 = arith.constant 0.000000e+00 : f32
    %31 = vector.broadcast %cst_22 : f32 to vector<256x128xf32>
    %32 = arith.maximumf %30, %31 : vector<256x128xf32>
    %c0_23 = arith.constant 0 : index
    %c0_24 = arith.constant 0 : index
    %33 = vector.load %arg4[%c0_23, %c0_24] : memref<64x256xbf16, #tpu.memory_space<vmem>>, vector<64x256xbf16>
    %34 = arith.truncf %32 : vector<256x128xf32> to vector<256x128xbf16>
    %cst_25 = arith.constant dense<0.000000e+00> : vector<64x128xf32>
    %35 = tpu.matmul %33, %34, %cst_25 {dimension_numbers = #tpu.dot_dimension_numbers<[1], [0], [0], [1], [0, 0, 1, 1], [], []>} : vector<64x256xbf16>, vector<256x128xbf16>, vector<64x128xf32> -> vector<64x128xf32>
    %36 = arith.truncf %35 : vector<64x128xf32> to vector<64x128xbf16>
    %c3 = arith.constant 3 : index
    %c0_26 = arith.constant 0 : index
    %c0_27 = arith.constant 0 : index
    %37 = vector.load %arg2[%c3, %c0_26, %c0_27] : memref<12x128x128xbf16, #tpu.memory_space<vmem>>, vector<1x128x128xbf16>
    %38 = vector.shape_cast %37 : vector<1x128x128xbf16> to vector<128x128xbf16>
    %cst_28 = arith.constant dense<0.000000e+00> : vector<64x128xf32>
    %39 = tpu.matmul %36, %38, %cst_28 {dimension_numbers = #tpu.dot_dimension_numbers<[1], [0], [0], [1], [0, 0, 1, 1], [], []>} : vector<64x128xbf16>, vector<128x128xbf16>, vector<64x128xf32> -> vector<64x128xf32>
    %c3_29 = arith.constant 3 : index
    %c0_30 = arith.constant 0 : index
    %c0_31 = arith.constant 0 : index
    %40 = vector.load %arg3[%c3_29, %c0_30, %c0_31] : memref<12x1x128xf32, #tpu.memory_space<vmem>>, vector<1x1x128xf32>
    %41 = vector.shape_cast %40 : vector<1x1x128xf32> to vector<1x128xf32>
    %42 = vector.broadcast %41 : vector<1x128xf32> to vector<64x128xf32>
    %43 = arith.addf %39, %42 : vector<64x128xf32>
    %cst_32 = arith.constant 0.000000e+00 : f32
    %44 = vector.broadcast %cst_32 : f32 to vector<64x128xf32>
    %45 = arith.maximumf %43, %44 : vector<64x128xf32>
    %46 = arith.truncf %45 : vector<64x128xf32> to vector<64x128xbf16>
    %c4 = arith.constant 4 : index
    %c0_33 = arith.constant 0 : index
    %c0_34 = arith.constant 0 : index
    %47 = vector.load %arg2[%c4, %c0_33, %c0_34] : memref<12x128x128xbf16, #tpu.memory_space<vmem>>, vector<1x128x128xbf16>
    %48 = vector.shape_cast %47 : vector<1x128x128xbf16> to vector<128x128xbf16>
    %cst_35 = arith.constant dense<0.000000e+00> : vector<64x128xf32>
    %49 = tpu.matmul %46, %48, %cst_35 {dimension_numbers = #tpu.dot_dimension_numbers<[1], [0], [0], [1], [0, 0, 1, 1], [], []>} : vector<64x128xbf16>, vector<128x128xbf16>, vector<64x128xf32> -> vector<64x128xf32>
    %c4_36 = arith.constant 4 : index
    %c0_37 = arith.constant 0 : index
    %c0_38 = arith.constant 0 : index
    %50 = vector.load %arg3[%c4_36, %c0_37, %c0_38] : memref<12x1x128xf32, #tpu.memory_space<vmem>>, vector<1x1x128xf32>
    %51 = vector.shape_cast %50 : vector<1x1x128xf32> to vector<1x128xf32>
    %52 = vector.broadcast %51 : vector<1x128xf32> to vector<64x128xf32>
    %53 = arith.addf %49, %52 : vector<64x128xf32>
    %cst_39 = arith.constant 0.000000e+00 : f32
    %54 = vector.broadcast %cst_39 : f32 to vector<64x128xf32>
    %55 = arith.maximumf %53, %54 : vector<64x128xf32>
    %56 = arith.truncf %55 : vector<64x128xf32> to vector<64x128xbf16>
    %c5 = arith.constant 5 : index
    %c0_40 = arith.constant 0 : index
    %c0_41 = arith.constant 0 : index
    %57 = vector.load %arg2[%c5, %c0_40, %c0_41] : memref<12x128x128xbf16, #tpu.memory_space<vmem>>, vector<1x128x128xbf16>
    %58 = vector.shape_cast %57 : vector<1x128x128xbf16> to vector<128x128xbf16>
    %cst_42 = arith.constant dense<0.000000e+00> : vector<64x128xf32>
    %59 = tpu.matmul %56, %58, %cst_42 {dimension_numbers = #tpu.dot_dimension_numbers<[1], [0], [0], [1], [0, 0, 1, 1], [], []>} : vector<64x128xbf16>, vector<128x128xbf16>, vector<64x128xf32> -> vector<64x128xf32>
    %c5_43 = arith.constant 5 : index
    %c0_44 = arith.constant 0 : index
    %c0_45 = arith.constant 0 : index
    %60 = vector.load %arg3[%c5_43, %c0_44, %c0_45] : memref<12x1x128xf32, #tpu.memory_space<vmem>>, vector<1x1x128xf32>
    %61 = vector.shape_cast %60 : vector<1x1x128xf32> to vector<1x128xf32>
    %62 = vector.broadcast %61 : vector<1x128xf32> to vector<64x128xf32>
    %63 = arith.addf %59, %62 : vector<64x128xf32>
    %cst_46 = arith.constant 0.000000e+00 : f32
    %64 = vector.broadcast %cst_46 : f32 to vector<64x128xf32>
    %65 = arith.maximumf %63, %64 : vector<64x128xf32>
    %c0_47 = arith.constant 0 : index
    %c0_48 = arith.constant 0 : index
    %66 = vector.load %arg5[%c0_47, %c0_48] : memref<16x64xbf16, #tpu.memory_space<vmem>>, vector<16x64xbf16>
    %67 = arith.truncf %65 : vector<64x128xf32> to vector<64x128xbf16>
    %cst_49 = arith.constant dense<0.000000e+00> : vector<16x128xf32>
    %68 = tpu.matmul %66, %67, %cst_49 {dimension_numbers = #tpu.dot_dimension_numbers<[1], [0], [0], [1], [0, 0, 1, 1], [], []>} : vector<16x64xbf16>, vector<64x128xbf16>, vector<16x128xf32> -> vector<16x128xf32>
    %69 = arith.truncf %68 : vector<16x128xf32> to vector<16x128xbf16>
    %c6 = arith.constant 6 : index
    %c0_50 = arith.constant 0 : index
    %c0_51 = arith.constant 0 : index
    %70 = vector.load %arg2[%c6, %c0_50, %c0_51] : memref<12x128x128xbf16, #tpu.memory_space<vmem>>, vector<1x128x128xbf16>
    %71 = vector.shape_cast %70 : vector<1x128x128xbf16> to vector<128x128xbf16>
    %cst_52 = arith.constant dense<0.000000e+00> : vector<16x128xf32>
    %72 = tpu.matmul %69, %71, %cst_52 {dimension_numbers = #tpu.dot_dimension_numbers<[1], [0], [0], [1], [0, 0, 1, 1], [], []>} : vector<16x128xbf16>, vector<128x128xbf16>, vector<16x128xf32> -> vector<16x128xf32>
    %c6_53 = arith.constant 6 : index
    %c0_54 = arith.constant 0 : index
    %c0_55 = arith.constant 0 : index
    %73 = vector.load %arg3[%c6_53, %c0_54, %c0_55] : memref<12x1x128xf32, #tpu.memory_space<vmem>>, vector<1x1x128xf32>
    %74 = vector.shape_cast %73 : vector<1x1x128xf32> to vector<1x128xf32>
    %75 = vector.broadcast %74 : vector<1x128xf32> to vector<16x128xf32>
    %76 = arith.addf %72, %75 : vector<16x128xf32>
    %cst_56 = arith.constant 0.000000e+00 : f32
    %77 = vector.broadcast %cst_56 : f32 to vector<16x128xf32>
    %78 = arith.maximumf %76, %77 : vector<16x128xf32>
    %79 = arith.truncf %78 : vector<16x128xf32> to vector<16x128xbf16>
    %c7 = arith.constant 7 : index
    %c0_57 = arith.constant 0 : index
    %c0_58 = arith.constant 0 : index
    %80 = vector.load %arg2[%c7, %c0_57, %c0_58] : memref<12x128x128xbf16, #tpu.memory_space<vmem>>, vector<1x128x128xbf16>
    %81 = vector.shape_cast %80 : vector<1x128x128xbf16> to vector<128x128xbf16>
    %cst_59 = arith.constant dense<0.000000e+00> : vector<16x128xf32>
    %82 = tpu.matmul %79, %81, %cst_59 {dimension_numbers = #tpu.dot_dimension_numbers<[1], [0], [0], [1], [0, 0, 1, 1], [], []>} : vector<16x128xbf16>, vector<128x128xbf16>, vector<16x128xf32> -> vector<16x128xf32>
    %c7_60 = arith.constant 7 : index
    %c0_61 = arith.constant 0 : index
    %c0_62 = arith.constant 0 : index
    %83 = vector.load %arg3[%c7_60, %c0_61, %c0_62] : memref<12x1x128xf32, #tpu.memory_space<vmem>>, vector<1x1x128xf32>
    %84 = vector.shape_cast %83 : vector<1x1x128xf32> to vector<1x128xf32>
    %85 = vector.broadcast %84 : vector<1x128xf32> to vector<16x128xf32>
    %86 = arith.addf %82, %85 : vector<16x128xf32>
    %cst_63 = arith.constant 0.000000e+00 : f32
    %87 = vector.broadcast %cst_63 : f32 to vector<16x128xf32>
    %88 = arith.maximumf %86, %87 : vector<16x128xf32>
    %89 = arith.truncf %88 : vector<16x128xf32> to vector<16x128xbf16>
    %c8 = arith.constant 8 : index
    %c0_64 = arith.constant 0 : index
    %c0_65 = arith.constant 0 : index
    %90 = vector.load %arg2[%c8, %c0_64, %c0_65] : memref<12x128x128xbf16, #tpu.memory_space<vmem>>, vector<1x128x128xbf16>
    %91 = vector.shape_cast %90 : vector<1x128x128xbf16> to vector<128x128xbf16>
    %cst_66 = arith.constant dense<0.000000e+00> : vector<16x128xf32>
    %92 = tpu.matmul %89, %91, %cst_66 {dimension_numbers = #tpu.dot_dimension_numbers<[1], [0], [0], [1], [0, 0, 1, 1], [], []>} : vector<16x128xbf16>, vector<128x128xbf16>, vector<16x128xf32> -> vector<16x128xf32>
    %c8_67 = arith.constant 8 : index
    %c0_68 = arith.constant 0 : index
    %c0_69 = arith.constant 0 : index
    %93 = vector.load %arg3[%c8_67, %c0_68, %c0_69] : memref<12x1x128xf32, #tpu.memory_space<vmem>>, vector<1x1x128xf32>
    %94 = vector.shape_cast %93 : vector<1x1x128xf32> to vector<1x128xf32>
    %95 = vector.broadcast %94 : vector<1x128xf32> to vector<16x128xf32>
    %96 = arith.addf %92, %95 : vector<16x128xf32>
    %cst_70 = arith.constant 0.000000e+00 : f32
    %97 = vector.broadcast %cst_70 : f32 to vector<16x128xf32>
    %98 = arith.maximumf %96, %97 : vector<16x128xf32>
    %c0_71 = arith.constant 0 : index
    %c0_72 = arith.constant 0 : index
    %99 = vector.load %arg6[%c0_71, %c0_72] : memref<4x16xbf16, #tpu.memory_space<vmem>>, vector<4x16xbf16>
    %100 = arith.truncf %98 : vector<16x128xf32> to vector<16x128xbf16>
    %cst_73 = arith.constant dense<0.000000e+00> : vector<4x128xf32>
    %101 = tpu.matmul %99, %100, %cst_73 {dimension_numbers = #tpu.dot_dimension_numbers<[1], [0], [0], [1], [0, 0, 1, 1], [], []>} : vector<4x16xbf16>, vector<16x128xbf16>, vector<4x128xf32> -> vector<4x128xf32>
    %102 = arith.truncf %101 : vector<4x128xf32> to vector<4x128xbf16>
    %c9 = arith.constant 9 : index
    %c0_74 = arith.constant 0 : index
    %c0_75 = arith.constant 0 : index
    %103 = vector.load %arg2[%c9, %c0_74, %c0_75] : memref<12x128x128xbf16, #tpu.memory_space<vmem>>, vector<1x128x128xbf16>
    %104 = vector.shape_cast %103 : vector<1x128x128xbf16> to vector<128x128xbf16>
    %cst_76 = arith.constant dense<0.000000e+00> : vector<4x128xf32>
    %105 = tpu.matmul %102, %104, %cst_76 {dimension_numbers = #tpu.dot_dimension_numbers<[1], [0], [0], [1], [0, 0, 1, 1], [], []>} : vector<4x128xbf16>, vector<128x128xbf16>, vector<4x128xf32> -> vector<4x128xf32>
    %c9_77 = arith.constant 9 : index
    %c0_78 = arith.constant 0 : index
    %c0_79 = arith.constant 0 : index
    %106 = vector.load %arg3[%c9_77, %c0_78, %c0_79] : memref<12x1x128xf32, #tpu.memory_space<vmem>>, vector<1x1x128xf32>
    %107 = vector.shape_cast %106 : vector<1x1x128xf32> to vector<1x128xf32>
    %108 = vector.broadcast %107 : vector<1x128xf32> to vector<4x128xf32>
    %109 = arith.addf %105, %108 : vector<4x128xf32>
    %cst_80 = arith.constant 0.000000e+00 : f32
    %110 = vector.broadcast %cst_80 : f32 to vector<4x128xf32>
    %111 = arith.maximumf %109, %110 : vector<4x128xf32>
    %112 = arith.truncf %111 : vector<4x128xf32> to vector<4x128xbf16>
    %c10 = arith.constant 10 : index
    %c0_81 = arith.constant 0 : index
    %c0_82 = arith.constant 0 : index
    %113 = vector.load %arg2[%c10, %c0_81, %c0_82] : memref<12x128x128xbf16, #tpu.memory_space<vmem>>, vector<1x128x128xbf16>
    %114 = vector.shape_cast %113 : vector<1x128x128xbf16> to vector<128x128xbf16>
    %cst_83 = arith.constant dense<0.000000e+00> : vector<4x128xf32>
    %115 = tpu.matmul %112, %114, %cst_83 {dimension_numbers = #tpu.dot_dimension_numbers<[1], [0], [0], [1], [0, 0, 1, 1], [], []>} : vector<4x128xbf16>, vector<128x128xbf16>, vector<4x128xf32> -> vector<4x128xf32>
    %c10_84 = arith.constant 10 : index
    %c0_85 = arith.constant 0 : index
    %c0_86 = arith.constant 0 : index
    %116 = vector.load %arg3[%c10_84, %c0_85, %c0_86] : memref<12x1x128xf32, #tpu.memory_space<vmem>>, vector<1x1x128xf32>
    %117 = vector.shape_cast %116 : vector<1x1x128xf32> to vector<1x128xf32>
    %118 = vector.broadcast %117 : vector<1x128xf32> to vector<4x128xf32>
    %119 = arith.addf %115, %118 : vector<4x128xf32>
    %cst_87 = arith.constant 0.000000e+00 : f32
    %120 = vector.broadcast %cst_87 : f32 to vector<4x128xf32>
    %121 = arith.maximumf %119, %120 : vector<4x128xf32>
    %122 = arith.truncf %121 : vector<4x128xf32> to vector<4x128xbf16>
    %c11 = arith.constant 11 : index
    %c0_88 = arith.constant 0 : index
    %c0_89 = arith.constant 0 : index
    %123 = vector.load %arg2[%c11, %c0_88, %c0_89] : memref<12x128x128xbf16, #tpu.memory_space<vmem>>, vector<1x128x128xbf16>
    %124 = vector.shape_cast %123 : vector<1x128x128xbf16> to vector<128x128xbf16>
    %cst_90 = arith.constant dense<0.000000e+00> : vector<4x128xf32>
    %125 = tpu.matmul %122, %124, %cst_90 {dimension_numbers = #tpu.dot_dimension_numbers<[1], [0], [0], [1], [0, 0, 1, 1], [], []>} : vector<4x128xbf16>, vector<128x128xbf16>, vector<4x128xf32> -> vector<4x128xf32>
    %c11_91 = arith.constant 11 : index
    %c0_92 = arith.constant 0 : index
    %c0_93 = arith.constant 0 : index
    %126 = vector.load %arg3[%c11_91, %c0_92, %c0_93] : memref<12x1x128xf32, #tpu.memory_space<vmem>>, vector<1x1x128xf32>
    %127 = vector.shape_cast %126 : vector<1x1x128xf32> to vector<1x128xf32>
    %128 = vector.broadcast %127 : vector<1x128xf32> to vector<4x128xf32>
    %129 = arith.addf %125, %128 : vector<4x128xf32>
    %cst_94 = arith.constant 0.000000e+00 : f32
    %130 = vector.broadcast %cst_94 : f32 to vector<4x128xf32>
    %131 = arith.maximumf %129, %130 : vector<4x128xf32>
    %cst_95 = arith.constant dense<0.000000e+00> : vector<128xf32>
    %132 = vector.multi_reduction <add>, %131, %cst_95 [0] : vector<4x128xf32> to vector<128xf32>
    %133 = vector.shape_cast %132 : vector<128xf32> to vector<1x128xf32>
    %cst_96 = arith.constant 4.000000e+00 : f32
    %134 = vector.broadcast %cst_96 : f32 to vector<1x128xf32>
    %135 = arith.divf %133, %134 : vector<1x128xf32>
    %c0_97 = arith.constant 0 : index
    %c0_98 = arith.constant 0 : index
    %c0_99 = arith.constant 0 : index
    %136 = vector.load %arg7[%c0_97, %c0_98, %c0_99] : memref<1x1x128xf32, #tpu.memory_space<vmem>>, vector<1x1x128xf32>
    %137 = vector.shape_cast %136 : vector<1x1x128xf32> to vector<1x128xf32>
    %138 = vector.shape_cast %135 : vector<1x128xf32> to vector<1x1x128xf32>
    tpu.vector_store %arg7[%c0_97, %c0_98, %c0_99], %138 {strides = array<i32>} : memref<1x1x128xf32, #tpu.memory_space<vmem>>, vector<1x1x128xf32>,
    return
  }
  func.func @transform_0(%arg0: i32) -> (i32, i32, i32) {
    %c0_i32 = arith.constant 0 : i32
    %c0_i32_0 = arith.constant 0 : i32
    %c0_i32_1 = arith.constant 0 : i32
    return %arg0, %c0_i32, %c0_i32_0 : i32, i32, i32
  }
  func.func @transform_1(%arg0: i32) -> (i32, i32, i32) {
    %c0_i32 = arith.constant 0 : i32
    %c0_i32_0 = arith.constant 0 : i32
    %c0_i32_1 = arith.constant 0 : i32
    %c0_i32_2 = arith.constant 0 : i32
    return %c0_i32, %c0_i32_0, %c0_i32_1 : i32, i32, i32
  }
  func.func @transform_2(%arg0: i32) -> (i32, i32, i32) {
    %c0_i32 = arith.constant 0 : i32
    %c0_i32_0 = arith.constant 0 : i32
    %c0_i32_1 = arith.constant 0 : i32
    %c0_i32_2 = arith.constant 0 : i32
    return %c0_i32, %c0_i32_0, %c0_i32_1 : i32, i32, i32
  }
  func.func @transform_3(%arg0: i32) -> (i32, i32) {
    %c0_i32 = arith.constant 0 : i32
    %c0_i32_0 = arith.constant 0 : i32
    %c0_i32_1 = arith.constant 0 : i32
    return %c0_i32, %c0_i32_0 : i32, i32
  }
  func.func @transform_4(%arg0: i32) -> (i32, i32) {
    %c0_i32 = arith.constant 0 : i32
    %c0_i32_0 = arith.constant 0 : i32
    %c0_i32_1 = arith.constant 0 : i32
    return %c0_i32, %c0_i32_0 : i32, i32
  }
  func.func @transform_5(%arg0: i32) -> (i32, i32) {
    %c0_i32 = arith.constant 0 : i32
    %c0_i32_0 = arith.constant 0 : i32
    %c0_i32_1 = arith.constant 0 : i32
    return %c0_i32, %c0_i32_0 : i32, i32
  }
  func.func @transform_6(%arg0: i32) -> (i32, i32, i32) {
    %c0_i32 = arith.constant 0 : i32
    %c0_i32_0 = arith.constant 0 : i32
    %c0_i32_1 = arith.constant 0 : i32
    return %arg0, %c0_i32, %c0_i32_0 : i32, i32, i32
  }
}

</mosaic_0001>

<bundles_post_ra>
// kernel: tpu_custom_call.1
= control target key start
LH: loop header
LB: loop body
LE: loop exit
PB: predicated region body
PF: predicated region fallthrough
CT: control target
= control target key end

     0   :  { %11 = vsyncpa [#allocation3], 0  ;;  %s4410_s0 = inlined_call_operand.hbm [shape: bf16[2,256,128], index: 0, kind: input, shape index: {}]   ;;  %s4411_s1 = inlined_call_operand.hbm [shape: bf16[12,128,128], index: 1, kind: input, shape index: {}]   ;;  %s4412_s2 = inlined_call_operand.hbm [shape: f32[12,1,128], index: 2, kind: input, shape index: {}]   ;;  %s4413_s3 = inlined_call_operand.hbm [shape: bf16[64,256], index: 3, kind: input, shape index: {}]   ;;  %s4414_s4 = inlined_call_operand.vmem [shape: bf16[16,64], index: 4, kind: input, shape index: {}]   ;;  %s4415_s5 = inlined_call_operand.vmem [shape: bf16[4,16], index: 5, kind: input, shape index: {}]   ;;  %s4416_s6 = inlined_call_operand.hbm [shape: f32[2,1,128], index: 6, kind: output, shape index: {}]  }
   0x1   :  { %13 = vsyncpa [#allocation3 + $0x1], 0 }
   0x2   :  { %14 = vsyncpa [#allocation6], 0 }
   0x3   :  { %15 = vsyncpa [#allocation9], 0 }
   0x4   :  { %16 = vsyncpa [#allocation4], 0 }
   0x5   :  { %18 = vsyncpa [#allocation4 + $0x1], 0  ;;  %s3930_s21 = smov 0   ;;  %s3932_s22 = smov 0  }
   0x6   :  { %s3934_s23 = smov 0   ;;  %s3936_s24 = smov 0  }
   0x7 LB: > { %s3951_s25 = sadd.s32 4294967295, %s3880_s24   ;;  %s2766_s26 = sadd.s32 4294967294, %s3880_s24   ;;  %s3880_s24 = sphi %s3936_s24, %s4443_s24   ;;  %s3876_s23 = sphi %s3934_s23, %s4442_s23   ;;  %s3872_s22 = sphi %s3932_s22, %s4441_s22   ;;  %s3868_s21 = sphi %s3930_s21, %s4440_s21  }
   0x8   : > { %p44_p0 = scmp.ne.s32.totalorder %s3872_s22, %s3868_s21  ;;  %p4417_p1 = scmp.eq.s32.totalorder %s3951_s25, 0 }
   0x9   : > { %p179_p3 = scmp.eq.s32.totalorder %s2766_s26, 1  ;;  %p2767_p5 = scmp.ge.s32.totalorder %s3880_s24, 1 }
   0xa   : > { %p3960_p4 = por %p4417_p1, %p44_p0  ;;  %p186_p7 = scmp.lt.s32.totalorder %s3880_s24, 3 }
   0xb   : > { %p3965_p6 = por %p179_p3, %p44_p0  ;;  %s3882_s30 = smov [#allocation5]  }
   0xc   : > { %s4422_s27 = scalar_select %p3960_p4, 1, 0 }
   0xd   : > { %s4423_s28 = scalar_select %p3965_p6, 1, 0 }
   0xe   : > { %p3970_p8 = pnand %p2767_p5, %p186_p7  ;;  %s198_s7 = sshll.u32 %s3882_s30, 4  ;;  %s3974_s7 = int_to_ptr.vmem [resolvable:$true] %s198_s7 }
   0xf   : > { %s3883_s9 = smov [#allocation7]   ;;  %s3692_s13 = scalar_lea.hbm %s4411_s1, 12288 }
  0x10   : > { %s4424_s29 = scalar_select %p3970_p8, 1, 0 }
  0x11   : > { %p3498_p9 = pneg %p3970_p8  ;;  %s211_s10 = sshll.u32 %s3883_s9, 4  ;;  %s3985_s10 = int_to_ptr.vmem [resolvable:$true] %s211_s10 }
  0x12   : > { %p3693_p12 = scmp.ne.s32.totalorder %s4411_s1, %s3692_s13  ;;  %p3699_p5 = scmp.lt.u32.totalorder %s3692_s13, %s4411_s1 }
  0x13   : > { %p3981_p11 = pnand %p3498_p9, %p4417_p1 }
  0x15   : > { %p3995_p13 = pneg %p3981_p11 }
  0x17   : > { %p3695_p0 = pnand %p3995_p13, %p3693_p12 }
  0x19   : > { %p3696_p3 = pneg %p3695_p0 }
  0x1b   : > { %p3701_p7 = pnand %p3699_p5, %p3696_p3 }
  0x1d   : > { %3704 = shalt.err (!%p3701_p7)
}
  0x1e   : > { %s3705_s19 = scalar_lea.vmem %s3974_s7, 12288  ;;  %p3713_p2 = scmp.lt.s32.totalorder %s3974_s7, %s3974_s7 }
  0x1f   : > { %p3706_p9 = scmp.ne.s32.totalorder %s3974_s7, %s3705_s19  ;;  %p3714_p6 = scmp.lt.s32.totalorder %s3705_s19, %s3705_s19 }
  0x21   : > { %p3708_p10 = pnand %p3706_p9, %p3995_p13  ;;  %p3715_p12 = por %p3714_p6, %p3713_p2 }
  0x23   : > { %p3709_p1 = pneg %p3708_p10 }
  0x25   : > { %p3716_p0 = pnand %p3715_p12, %p3709_p1 }
  0x27   : > { %3719 = shalt.err (!%p3716_p0)
}
  0x28   : > { %s4418_s20 = smov 64   ;;  %s4419_s26 = smov 4  }
  0x29   : > { %3501 = dma.hbm_to_vmem [thread:$0]  (!%p3981_p11), %s4411_s1, 12288, %s3974_s7, [#allocation6], %s4418_s20, %s4418_s20, %s4419_s26  }
  0x2a   : > { %s3720_s13 = scalar_lea.hbm %s4412_s2, 192 }
  0x2b   : > { %p3721_p1 = scmp.ne.s32.totalorder %s4412_s2, %s3720_s13  ;;  %p3727_p10 = scmp.lt.u32.totalorder %s3720_s13, %s4412_s2 }
  0x2d   : > { %p3723_p2 = pnand %p3721_p1, %p3995_p13 }
  0x2f   : > { %p3724_p6 = pneg %p3723_p2 }
  0x31   : > { %p3729_p3 = pnand %p3727_p10, %p3724_p6 }
  0x33   : > { %3732 = shalt.err (!%p3729_p3)
}
  0x34   : > { %s3733_s7 = scalar_lea.vmem %s3985_s10, 192  ;;  %p3741_p12 = scmp.lt.s32.totalorder %s3985_s10, %s3985_s10 }
  0x35   : > { %p3734_p5 = scmp.ne.s32.totalorder %s3985_s10, %s3733_s7  ;;  %p3742_p0 = scmp.lt.s32.totalorder %s3733_s7, %s3733_s7 }
  0x37   : > { %p3736_p7 = pnand %p3734_p5, %p3995_p13  ;;  %p3743_p1 = por %p3742_p0, %p3741_p12 }
  0x39   : > { %p3737_p9 = pneg %p3736_p7 }
  0x3b   : > { %p3744_p2 = pnand %p3743_p1, %p3737_p9 }
  0x3d   : > { %3747 = shalt.err (!%p3744_p2)
}
  0x3e   : > { %s3886_s19 = smov 16   ;;  %s3887_s30 = smov 1  }
  0x3f   : > { %3504 = dma.hbm_to_vmem [thread:$0]  (!%p3981_p11), %s4412_s2, 192, %s3985_s10, [#allocation6], %s3886_s19, %s3886_s19, %s3887_s30  }
  0x40   : > { %s3888_s12 = smov [#allocation8]   ;;  %s3748_s17 = scalar_lea.hbm %s4413_s3, 1024 }
  0x41   : > { %s224_s13 = sshll.u32 %s3888_s12, 4  ;;  %p3749_p6 = scmp.ne.s32.totalorder %s4413_s3, %s3748_s17  ;;  %s225_s13 = int_to_ptr.vmem [resolvable:$true] %s224_s13 }
  0x42   : > { %p3755_p5 = scmp.lt.u32.totalorder %s3748_s17, %s4413_s3 }
  0x43   : > { %p3751_p10 = pnand %p3749_p6, %p3995_p13 }
  0x45   : > { %p3752_p3 = pneg %p3751_p10 }
  0x47   : > { %p3757_p7 = pnand %p3755_p5, %p3752_p3 }
  0x49   : > { %3760 = shalt.err (!%p3757_p7)
}
  0x4a   : > { %s3761_s10 = scalar_lea.vmem %s225_s13, 1024  ;;  %p3769_p1 = scmp.lt.s32.totalorder %s225_s13, %s225_s13 }
  0x4b   : > { %p3762_p9 = scmp.ne.s32.totalorder %s225_s13, %s3761_s10  ;;  %p3770_p2 = scmp.lt.s32.totalorder %s3761_s10, %s3761_s10 }
  0x4d   : > { %p3764_p12 = pnand %p3762_p9, %p3995_p13  ;;  %p3771_p4 = por %p3770_p2, %p3769_p1 }
  0x4f   : > { %p3765_p0 = pneg %p3764_p12 }
  0x51   : > { %p3772_p8 = pnand %p3771_p4, %p3765_p0 }
  0x53   : > { %3775 = shalt.err (!%p3772_p8)
}
  0x54   : > { %s3889_s19 = smov 128   ;;  %s3890_s16 = smov 8  }
  0x55   : > { %3507 = dma.hbm_to_vmem [thread:$0]  (!%p3981_p11), %s4413_s3, 1024, %s225_s13, [#allocation9], %s3889_s19, %s3889_s19, %s3890_s16  }
  0x56   : > { %s4061_s30 = sadd.s32 1, %s3880_s24   ;;  %s31_s11 = sadd.s32 1, %s3876_s23 }
  0x57   : > { %s28_s9 = ssub.s32 %s3880_s24, %s4061_s30  ;;  %p38_p8 = scmp.ne.s32.totalorder %s3876_s23, %s3872_s22 }
  0x58   : > { %p29_p4 = scmp.eq.s32.totalorder %s28_s9, 0  ;;  %p39_p13 = scmp.eq.s32.totalorder %s3880_s24, 0 }
  0x59   : > { %p3519_p6 = scmp.lt.s32.totalorder %s3880_s24, 2  ;;  %p4427_p3 = scmp.eq.s32.totalorder %s3951_s25, 1 }
  0x5a   : > { %s4071_s12 = scalar_select %p29_p4, %s3876_s23, %s31_s11  }
  0x5b   : > { %p40_p10 = por %p39_p13, %p38_p8  ;;  %p4075_p5 = por %p4427_p3, %p38_p8 }
  0x5c   : > { %s244_s8 = sand.u32 1, %s3876_s23   ;;  %s2918_s15 = sshll.u32 %s3880_s24, 11 }
  0x5d   : > { %s2772_s13 = sshll.u32 %s244_s8, 7  ;;  %s4084_s7 = scalar_lea.hbm %s4410_s0, %s2918_s15 }
  0x5e   : > { %s248_s10 = scalar_lea.vmem [#allocation2], %s2772_s13  ;;  %p4086_p11 = pnand %p3519_p6, %p40_p10 }
  0x5f   : > { %s255_s19 = sshll.u32 %s248_s10, 4  ;;  %s4092_s20 = scalar_lea.sflag [#allocation3], %s244_s8  ;;  %s4090_s19 = int_to_ptr.vmem [resolvable:$true] %s255_s19 }
  0x60   : > { %s3776_s26 = scalar_lea.hbm %s4084_s7, 2048  ;;  %p3778_p9 = pneg %p4086_p11 }
  0x61   : > { %p3777_p7 = scmp.ne.s32.totalorder %s4084_s7, %s3776_s26  ;;  %s3781_s15 = scalar_lea.hbm %s4410_s0, 4096 }
  0x62   : > { %p3782_p1 = scmp.lt.u32.totalorder %s4084_s7, %s4410_s0  ;;  %p3783_p2 = scmp.lt.u32.totalorder %s3781_s15, %s3776_s26 }
  0x63   : > { %p3779_p12 = pnand %p3778_p9, %p3777_p7  ;;  %p3785_p8 = scmp.lt.u32.totalorder %s3776_s26, %s4084_s7 }
  0x64   : > { %p3784_p4 = por %p3783_p2, %p3782_p1 }
  0x65   : > { %p3780_p0 = pneg %p3779_p12 }
  0x66   : > { %p3786_p13 = por %p3785_p8, %p3784_p4 }
  0x68   : > { %p3787_p6 = pnand %p3786_p13, %p3780_p0 }
  0x6a   : > { %3790 = shalt.err (!%p3787_p6)
}
  0x6b   : > { %s3791_s8 = scalar_lea.vmem %s4090_s19, 2048  ;;  %s3891_s18 = smov [#allocation2]  }
  0x6c   : > { %p3792_p10 = scmp.ne.s32.totalorder %s4090_s19, %s3791_s8  ;;  %s3796_s10 = sshll.u32 %s3891_s18, 4  ;;  %s3797_s10 = int_to_ptr.vmem [resolvable:$false] %s3796_s10 }
  0x6d   : > { %s3798_s9 = scalar_lea.vmem %s3797_s10, 4096  ;;  %p3799_p12 = scmp.lt.s32.totalorder %s4090_s19, %s3797_s10 }
  0x6e   : > { %p3794_p3 = pnand %p3792_p10, %p3778_p9  ;;  %p3800_p1 = scmp.lt.s32.totalorder %s3798_s9, %s3791_s8 }
  0x70   : > { %p3795_p7 = pneg %p3794_p3  ;;  %p3801_p2 = por %p3800_p1, %p3799_p12 }
  0x72   : > { %p3802_p4 = pnand %p3801_p2, %p3795_p7 }
  0x74   : > { %3805 = shalt.err (!%p3802_p4)
}
  0x75   : > { %s4430_s26 = smov 4   ;;  %s4431_s11 = smov 64  }
  0x76   : > { %3511 = dma.hbm_to_vmem [thread:$0]  (!%p4086_p11), %s4084_s7, 2048, %s4090_s19, %s4092_s20, %s4431_s11, %s4431_s11, %s4430_s26  }
  0x77   : > { %p4432_p9 = scmp.ne.s32.totalorder %s4424_s29, 0 }
  0x78   : > { %s4126_s15 = sand.u32 (!%p4432_p9), 1, %s3872_s22   ;;  %p4433_p0 = scmp.ne.s32.totalorder (!%p4432_p9), %s4422_s27, 0 }
  0x79   : > { %267 = sbr.rel (%p4432_p9) target bundleno = 3587 (0xe03), region = 44  ;;  %s2776_s13 = sshll.u32 (!%p4432_p9), %s4126_s15, 7 }
  0x7a   : > { %s270_s17 = scalar_lea.sflag (!%p4432_p9), [#allocation3], %s4126_s15  ;;  %s4130_s8 = scalar_lea.vmem (!%p4432_p9), [#allocation2], %s2776_s13 }
  0x80   : > { %3851 = dma.done.wait (%p4433_p0), %s270_s17, 2048  }
  0x81   : > { %3853 = vsyncadd (%p4433_p0), %s270_s17, 4294965248  ;;  %p4434_p11 = scmp.eq.s32.totalorder %s3951_s25, 0 }
  0x83   : > { %3855 = dma.done.wait (%p4434_p11), [#allocation6], 12480   ;;  %p4435_p8 = pmov %p4434_p11 }
  0x85   : > { %3857 = vsyncadd (%p4435_p8), [#allocation6], 4294954816  ;;  %p4436_p13 = pmov %p4435_p8 }
  0x86   : > { %p4437_p6 = pmov %p4435_p8 }
  0x87   : > { %3859 = dma.done.wait (%p4436_p13), [#allocation9], 1024  }
  0x88   : > { %3861 = vsyncadd (%p4437_p6), [#allocation9], 4294966272  ;;  %v3567_v0 = vld [vmem:[#allocation5] sm:$0xff]   ;;  %v3568_v1 = vld [vmem:[#allocation5 + $0x8] sm:$0xff]   ;;  %vm3893_vm0 = vmmov 0   ;;  %vm1860_vm1 = vcmask 523264  }
  0x89   : > { %3128 = vmatprep.subr.bf16.mxu0 %v3567_v0  ;;  %v3569_v2 = vld [vmem:[#allocation5 + $0x10] sm:$0xff]   ;;  %v3570_v3 = vld [vmem:[#allocation5 + $0x18] sm:$0xff]   ;;  %v3575_v4 = vld [vmem:[%s4130_s8] sm:$0xff]   ;;  %vm2258_vm2 = vcmask 130048   ;;  %vm2647_vm3 = vcmask 1043456   ;;  %s2915_s16 = sshll.u32 %s3951_s25, 4 }
  0x8a   : > { %3129 = vmatpush3.bf16.msra.mxu0 %v3567_v0  ;;  %3144 = vmatprep.mubr.bf16.mxu0 %v3575_v4  ;;  %v3571_v5 = vld [vmem:[#allocation5 + $0x20] sm:$0xff]   ;;  %v3572_v6 = vld [vmem:[#allocation5 + $0x28] sm:$0xff]   ;;  %v3573_v7 = vld [vmem:[#allocation5 + $0x30] sm:$0xff]   ;;  %s312_s20 = scalar_lea.vmem [#allocation10], %s4126_s15  ;;  %s4366_s26 = scalar_lea.hbm %s4416_s6, %s2915_s16 }
  0x8b   : > { %3130 = vmatprep.subr.bf16.mxu0 %v3568_v1  ;;  %v3574_v8 = vld [vmem:[#allocation5 + $0x38] sm:$0xff]   ;;  %v3591_v9 = vld [vmem:[#allocation5 + $0x40] sm:$0xff]   ;;  %v3592_v10 = vld [vmem:[#allocation5 + $0x48] sm:$0xff]   ;;  %s2671_s18 = sshll.u32 %s312_s20, 4  ;;  %s2659_s11 = scalar_lea.sflag [#allocation4], %s4126_s15  ;;  %s4368_s18 = int_to_ptr.vmem [resolvable:$true] %s2671_s18 }
  0x8c   : > { %3176 = vmatprep.subr.bf16.mxu1 %v3591_v9  ;;  %v3576_v11 = vld [vmem:[%s4130_s8 + $0x8] sm:$0xff]   ;;  %v3593_v12 = vld [vmem:[#allocation5 + $0x50] sm:$0xff]   ;;  %v3594_v14 = vld [vmem:[#allocation5 + $0x58] sm:$0xff]   ;;  %s3806_s13 = scalar_lea.vmem %s4368_s18, 16  ;;  %s3894_s25 = smov [#allocation10]  }
  0x8d   : > { %3177 = vmatpush3.bf16.msra.mxu1 %v3591_v9  ;;  %v3577_v13 = vld [vmem:[%s4130_s8 + $0x10] sm:$0xff]   ;;  %v3595_v15 = vld [vmem:[#allocation5 + $0x60] sm:$0xff]   ;;  %v3578_v16 = vld [vmem:[%s4130_s8 + $0x18] sm:$0xff]   ;;  %p3807_p10 = scmp.ne.s32.totalorder %s4368_s18, %s3806_s13  ;;  %s3810_s17 = sshll.u32 %s3894_s25, 4  ;;  %s3811_s17 = int_to_ptr.vmem [resolvable:$false] %s3810_s17 }
  0x8e   : > { %3131 = vmatpush3.bf16.msra.mxu0 %v3568_v1  ;;  %3178 = vmatprep.subr.bf16.mxu1 %v3592_v10  ;;  %v3579_v17 = vld [vmem:[%s4130_s8 + $0x20] sm:$0xff]   ;;  %v3596_v18 = vld [vmem:[#allocation5 + $0x68] sm:$0xff]   ;;  %v3581_v20 = vld [vmem:[%s4130_s8 + $0x30] sm:$0xff]   ;;  %p3813_p12 = scmp.lt.s32.totalorder %s4368_s18, %s3811_s17 }
  0x8f   : > { %3132 = vmatprep.subr.bf16.mxu0 %v3569_v2  ;;  %v3580_v19 = vld [vmem:[%s4130_s8 + $0x28] sm:$0xff]   ;;  %v3582_v21 = vld [vmem:[%s4130_s8 + $0x38] sm:$0xff]   ;;  %v3583_v22 = vld [vmem:[%s4130_s8 + $0x40] sm:$0xff]   ;;  %p3808_p3 = pnand %p3807_p10, %p4075_p5 }
  0x90   : > { %v3584_v23 = vld [vmem:[%s4130_s8 + $0x48] sm:$0xff]   ;;  %v3585_v24 = vld [vmem:[%s4130_s8 + $0x50] sm:$0xff]   ;;  %v3586_v25 = vld [vmem:[%s4130_s8 + $0x58] sm:$0xff]  }
  0x91   : > { %3179 = vmatpush3.bf16.msra.mxu1 %v3592_v10  ;;  %v3587_v26 = vld [vmem:[%s4130_s8 + $0x60] sm:$0xff]   ;;  %v3588_v27 = vld [vmem:[%s4130_s8 + $0x68] sm:$0xff]   ;;  %v3589_v28 = vld [vmem:[%s4130_s8 + $0x70] sm:$0xff]   ;;  %p3809_p7 = pneg %p3808_p3 }
  0x92   : > { %3133 = vmatpush3.bf16.msra.mxu0 %v3569_v2  ;;  %3180 = vmatprep.subr.bf16.mxu1 %v3593_v12  ;;  %v3590_v29 = vld [vmem:[%s4130_s8 + $0x78] sm:$0xff]   ;;  %v3597_v30 = vld [vmem:[#allocation5 + $0x70] sm:$0xff]   ;;  %v3599_v32 = vld [vmem:[#allocation5 + $0x80] sm:$0xff]   ;;  %s3812_s8 = scalar_lea.vmem %s3811_s17, 32 }
  0x93   : > { %3134 = vmatprep.subr.bf16.mxu0 %v3570_v3  ;;  %v3598_v31 = vld [vmem:[#allocation5 + $0x78] sm:$0xff]   ;;  %v3600_v33 = vld [vmem:[#allocation5 + $0x88] sm:$0xff]   ;;  %v3601_v34 = vld [vmem:[#allocation5 + $0x90] sm:$0xff]   ;;  %p3814_p1 = scmp.lt.s32.totalorder %s3812_s8, %s3806_s13 }
  0x94   : > { %v3602_v35 = vld [vmem:[#allocation5 + $0x98] sm:$0xff]   ;;  %v3603_v36 = vld [vmem:[#allocation5 + $0xa0] sm:$0xff]   ;;  %v3604_v37 = vld [vmem:[#allocation5 + $0xa8] sm:$0xff]  }
  0x95   : > { %3181 = vmatpush3.bf16.msra.mxu1 %v3593_v12  ;;  %v4160_v38 = vld [vmem:[#allocation7] ss:$0 sm:$0xff]  ;;  %p3815_p2 = por %p3814_p1, %p3813_p12 }
  0x96   : > { %3135 = vmatpush3.bf16.msra.mxu0 %v3570_v3  ;;  %3182 = vmatprep.subr.bf16.mxu1 %v3594_v14 }
  0x97   : > { %3136 = vmatprep.subr.bf16.mxu0 %v3571_v5  ;;  %p3816_p4 = pnand %p3815_p2, %p3809_p7 }
  0x99   : > { %3183 = vmatpush3.bf16.msra.mxu1 %v3594_v14 }
  0x9a   : > { %3137 = vmatpush3.bf16.msra.mxu0 %v3571_v5  ;;  %3184 = vmatprep.subr.bf16.mxu1 %v3595_v15 }
  0x9b   : > { %3138 = vmatprep.subr.bf16.mxu0 %v3572_v6 }
  0x9d   : > { %3185 = vmatpush3.bf16.msra.mxu1 %v3595_v15 }
  0x9e   : > { %3139 = vmatpush3.bf16.msra.mxu0 %v3572_v6  ;;  %3186 = vmatprep.subr.bf16.mxu1 %v3596_v18 }
  0x9f   : > { %3140 = vmatprep.subr.bf16.mxu0 %v3573_v7 }
  0xa1   : > { %3187 = vmatpush3.bf16.msra.mxu1 %v3596_v18 }
  0xa2   : > { %3141 = vmatpush3.bf16.msra.mxu0 %v3573_v7  ;;  %3188 = vmatprep.subr.bf16.mxu1 %v3597_v30 }
  0xa3   : > { %3142 = vmatprep.subr.bf16.mxu0 %v3574_v8 }
  0xa5   : > { %3189 = vmatpush3.bf16.msra.mxu1 %v3597_v30 }
  0xa6   : > { %3143 = vmatpush3.bf16.msra.mxu0 %v3574_v8  ;;  %3190 = vmatprep.subr.bf16.mxu1 %v3598_v31 }
  0xa7   : > { %3224 = vmatprep.subr.bf16.mxu0 %v3599_v32 }
  0xa9   : > { %3145 = vmatmul.mubr.bf16.vlgmr.msra.gmra.mrb[0].mxu0 %v3576_v11  ;;  %3191 = vmatpush3.bf16.msra.mxu1 %v3598_v31 }
  0xaa   : > { %3148 = vmatprep.mubr.bf16.mxu0 %v3577_v13  ;;  %3225 = vmatpush3.bf16.msra.mxu0 %v3599_v32 }
  0xab   : > { %3226 = vmatprep.subr.bf16.mxu0 %v3600_v33 }
  0xae   : > { %3227 = vmatpush3.bf16.msra.mxu0 %v3600_v33 }
  0xaf   : > { %3228 = vmatprep.subr.bf16.mxu0 %v3601_v34 }
  0xb1   : > { %3149 = vmatmul.mubr.bf16.gmra.mrb[4].mxu0 %v3578_v16 }
  0xb2   : > { %3152 = vmatprep.mubr.bf16.mxu0 %v3579_v17  ;;  %3229 = vmatpush3.bf16.msra.mxu0 %v3601_v34 }
  0xb3   : > { %3230 = vmatprep.subr.bf16.mxu0 %v3602_v35 }
  0xb6   : > { %3231 = vmatpush3.bf16.msra.mxu0 %v3602_v35 }
  0xb7   : > { %3232 = vmatprep.subr.bf16.mxu0 %v3603_v36 }
  0xb9   : > { %3153 = vmatmul.mubr.bf16.gmra.mrb[8].mxu0 %v3580_v19 }
  0xba   : > { %3156 = vmatprep.mubr.bf16.mxu0 %v3581_v20  ;;  %3233 = vmatpush3.bf16.msra.mxu0 %v3603_v36 }
  0xbb   : > { %3234 = vmatprep.subr.bf16.mxu0 %v3604_v37 }
  0xbe   : > { %3235 = vmatpush3.bf16.msra.mxu0 %v3604_v37 }
  0xc1   : > { %3157 = vmatmul.mubr.bf16.gmra.mrb[12].mxu0 %v3582_v21 }
  0xc2   : > { %3160 = vmatprep.mubr.bf16.mxu0 %v3583_v22 }
  0xc9   : > { %3161 = vmatmul.mubr.bf16.gmra.mrb[16].mxu0 %v3584_v23 }
  0xca   : > { %3164 = vmatprep.mubr.bf16.mxu0 %v3585_v24 }
  0xd1   : > { %3165 = vmatmul.mubr.bf16.gmra.mrb[20].mxu0 %v3586_v25 }
  0xd2   : > { %3168 = vmatprep.mubr.bf16.mxu0 %v3587_v26 }
  0xd9   : > { %3169 = vmatmul.mubr.bf16.gmra.mrb[24].mxu0 %v3588_v27 }
  0xda   : > { %3172 = vmatprep.mubr.bf16.mxu0 %v3589_v28 }
  0xe1   : > { %3173 = vmatmul.mubr.bf16.gmra.mrb[28].mxu0 %v3590_v29 }
 0x17c   : > { %v3146_v39 = vpop.f32.mrb[0].mxu0 }
 0x17d   : > { %v556_v40 = vadd.f32 %v3146_v39, %v4160_v38  ;;  %v547_v41 = vpop.f32.mrb[1].mxu0 }
 0x17e   : > { %v548_v42 = vadd.f32 %v4160_v38, %v547_v41  ;;  %v3147_v43 = vpop.f32.mrb[2].mxu0 }
 0x17f   : > { %v559_v44 = vadd.f32 %v3147_v43, %v4160_v38  ;;  %v550_v45 = vpop.f32.mrb[3].mxu0  ;;  %v676_v47 = vmax.f32 %v556_v40, 0.0 }
 0x180   : > { %v551_v46 = vadd.f32 %v4160_v38, %v550_v45  ;;  %v674_v49 = vmax.f32 %v548_v42, 0.0 }
 0x181   : > { %v677_v48 = vmax.f32 %v559_v44, 0.0 }
 0x182   : > { %v675_v50 = vmax.f32 %v551_v46, 0.0 }
 0x183   : > { %v707_v51 = vpack.c.bf16 %v677_v48, %v676_v47 }
 0x184   : > { %v3150_v52 = vpop.f32.mrb[4].mxu0  ;;  %v706_v53 = vpack.c.bf16 %v675_v50, %v674_v49 }
 0x185   : > { %v572_v54 = vadd.f32 %v3150_v52, %v4160_v38  ;;  %v563_v55 = vpop.f32.mrb[5].mxu0 }
 0x186   : > { %v564_v56 = vadd.f32 %v4160_v38, %v563_v55  ;;  %v3151_v57 = vpop.f32.mrb[6].mxu0  ;;  %3192 = vmatprep.mubr.bf16.mxu1 %v706_v53 }
 0x187   : > { %v575_v58 = vadd.f32 %v3151_v57, %v4160_v38  ;;  %v566_v59 = vpop.f32.mrb[7].mxu0  ;;  %3193 = vmatmul.mubr.bf16.vlgmr.msra.gmra.mrb[0].mxu1 %v707_v51  ;;  %v680_v61 = vmax.f32 %v572_v54, 0.0 }
 0x188   : > { %v567_v60 = vadd.f32 %v4160_v38, %v566_v59  ;;  %v678_v63 = vmax.f32 %v564_v56, 0.0 }
 0x189   : > { %v681_v62 = vmax.f32 %v575_v58, 0.0 }
 0x18a   : > { %v679_v0 = vmax.f32 %v567_v60, 0.0 }
 0x18b   : > { %v709_v1 = vpack.c.bf16 %v681_v62, %v680_v61 }
 0x18c   : > { %v708_v2 = vpack.c.bf16 %v679_v0, %v678_v63  ;;  %v3154_v3 = vpop.f32.mrb[8].mxu0 }
 0x18d   : > { %v588_v4 = vadd.f32 %v3154_v3, %v4160_v38  ;;  %v579_v5 = vpop.f32.mrb[9].mxu0 }
 0x18e   : > { %v580_v6 = vadd.f32 %v4160_v38, %v579_v5  ;;  %v3155_v7 = vpop.f32.mrb[10].mxu0  ;;  %3196 = vmatprep.mubr.bf16.mxu1 %v708_v2 }
 0x18f   : > { %v591_v8 = vadd.f32 %v3155_v7, %v4160_v38  ;;  %v582_v9 = vpop.f32.mrb[11].mxu0  ;;  %3197 = vmatmul.mubr.bf16.gmra.mrb[4].mxu1 %v709_v1  ;;  %v684_v11 = vmax.f32 %v588_v4, 0.0 }
 0x190   : > { %v583_v10 = vadd.f32 %v4160_v38, %v582_v9  ;;  %v682_v13 = vmax.f32 %v580_v6, 0.0 }
 0x191   : > { %v685_v12 = vmax.f32 %v591_v8, 0.0 }
 0x192   : > { %v683_v14 = vmax.f32 %v583_v10, 0.0 }
 0x193   : > { %v711_v15 = vpack.c.bf16 %v685_v12, %v684_v11 }
 0x194   : > { %v710_v16 = vpack.c.bf16 %v683_v14, %v682_v13  ;;  %v3158_v17 = vpop.f32.mrb[12].mxu0 }
 0x195   : > { %v604_v18 = vadd.f32 %v3158_v17, %v4160_v38  ;;  %v595_v19 = vpop.f32.mrb[13].mxu0 }
 0x196   : > { %v596_v20 = vadd.f32 %v4160_v38, %v595_v19  ;;  %v3159_v21 = vpop.f32.mrb[14].mxu0  ;;  %3200 = vmatprep.mubr.bf16.mxu1 %v710_v16 }
 0x197   : > { %v607_v22 = vadd.f32 %v3159_v21, %v4160_v38  ;;  %v598_v23 = vpop.f32.mrb[15].mxu0  ;;  %3201 = vmatmul.mubr.bf16.gmra.mrb[8].mxu1 %v711_v15  ;;  %v688_v25 = vmax.f32 %v604_v18, 0.0 }
 0x198   : > { %v599_v24 = vadd.f32 %v4160_v38, %v598_v23  ;;  %v686_v27 = vmax.f32 %v596_v20, 0.0 }
 0x199   : > { %v689_v26 = vmax.f32 %v607_v22, 0.0 }
 0x19a   : > { %v687_v28 = vmax.f32 %v599_v24, 0.0  ;;  %v3605_v24 = vld [vmem:[#allocation5 + $0xb0] sm:$0xff]  }
 0x19b   : > { %v713_v29 = vpack.c.bf16 %v689_v26, %v688_v25  ;;  %3236 = vmatprep.subr.bf16.mxu0 %v3605_v24  ;;  %v3606_v25 = vld [vmem:[#allocation5 + $0xb8] sm:$0xff]   ;;  %v4194_v26 = vld [vmem:[#allocation7 + $0x1] ss:$0 sm:$0xff] }
 0x19c   : > { %v712_v30 = vpack.c.bf16 %v687_v28, %v686_v27  ;;  %v3162_v31 = vpop.f32.mrb[16].mxu0  ;;  %3237 = vmatpush3.bf16.msra.mxu0 %v3605_v24 }
 0x19d   : > { %v620_v32 = vadd.f32 %v3162_v31, %v4160_v38  ;;  %v611_v33 = vpop.f32.mrb[17].mxu0  ;;  %3238 = vmatprep.subr.bf16.mxu0 %v3606_v25 }
 0x19e   : > { %v612_v34 = vadd.f32 %v4160_v38, %v611_v33  ;;  %v3163_v35 = vpop.f32.mrb[18].mxu0  ;;  %3204 = vmatprep.mubr.bf16.mxu1 %v712_v30 }
 0x19f   : > { %v623_v36 = vadd.f32 %v3163_v35, %v4160_v38  ;;  %v614_v37 = vpop.f32.mrb[19].mxu0  ;;  %3205 = vmatmul.mubr.bf16.gmra.mrb[12].mxu1 %v713_v29  ;;  %v692_v40 = vmax.f32 %v620_v32, 0.0 }
 0x1a0   : > { %v615_v39 = vadd.f32 %v4160_v38, %v614_v37  ;;  %v690_v42 = vmax.f32 %v612_v34, 0.0  ;;  %3239 = vmatpush3.bf16.msra.mxu0 %v3606_v25 }
 0x1a1   : > { %v693_v41 = vmax.f32 %v623_v36, 0.0 }
 0x1a2   : > { %v691_v43 = vmax.f32 %v615_v39, 0.0 }
 0x1a3   : > { %v715_v44 = vpack.c.bf16 %v693_v41, %v692_v40 }
 0x1a4   : > { %v714_v45 = vpack.c.bf16 %v691_v43, %v690_v42  ;;  %v3166_v46 = vpop.f32.mrb[20].mxu0 }
 0x1a5   : > { %v636_v47 = vadd.f32 %v3166_v46, %v4160_v38  ;;  %v627_v48 = vpop.f32.mrb[21].mxu0 }
 0x1a6   : > { %v628_v49 = vadd.f32 %v4160_v38, %v627_v48  ;;  %v3167_v50 = vpop.f32.mrb[22].mxu0  ;;  %3208 = vmatprep.mubr.bf16.mxu1 %v714_v45 }
 0x1a7   : > { %v639_v51 = vadd.f32 %v3167_v50, %v4160_v38  ;;  %v630_v52 = vpop.f32.mrb[23].mxu0  ;;  %3209 = vmatmul.mubr.bf16.gmra.mrb[16].mxu1 %v715_v44  ;;  %v696_v54 = vmax.f32 %v636_v47, 0.0 }
 0x1a8   : > { %v631_v53 = vadd.f32 %v4160_v38, %v630_v52  ;;  %v694_v56 = vmax.f32 %v628_v49, 0.0 }
 0x1a9   : > { %v697_v55 = vmax.f32 %v639_v51, 0.0 }
 0x1aa   : > { %v695_v57 = vmax.f32 %v631_v53, 0.0 }
 0x1ab   : > { %v717_v58 = vpack.c.bf16 %v697_v55, %v696_v54 }
 0x1ac   : > { %v716_v59 = vpack.c.bf16 %v695_v57, %v694_v56  ;;  %v3170_v60 = vpop.f32.mrb[24].mxu0 }
 0x1ad   : > { %v652_v61 = vadd.f32 %v3170_v60, %v4160_v38  ;;  %v643_v62 = vpop.f32.mrb[25].mxu0 }
 0x1ae   : > { %v644_v63 = vadd.f32 %v4160_v38, %v643_v62  ;;  %v3171_v0 = vpop.f32.mrb[26].mxu0  ;;  %3212 = vmatprep.mubr.bf16.mxu1 %v716_v59 }
 0x1af   : > { %v655_v1 = vadd.f32 %v3171_v0, %v4160_v38  ;;  %v646_v2 = vpop.f32.mrb[27].mxu0  ;;  %3213 = vmatmul.mubr.bf16.gmra.mrb[20].mxu1 %v717_v58  ;;  %v700_v4 = vmax.f32 %v652_v61, 0.0 }
 0x1b0   : > { %v647_v3 = vadd.f32 %v4160_v38, %v646_v2  ;;  %v698_v6 = vmax.f32 %v644_v63, 0.0 }
 0x1b1   : > { %v701_v5 = vmax.f32 %v655_v1, 0.0 }
 0x1b2   : > { %v699_v7 = vmax.f32 %v647_v3, 0.0 }
 0x1b3   : > { %v719_v8 = vpack.c.bf16 %v701_v5, %v700_v4 }
 0x1b4   : > { %v718_v9 = vpack.c.bf16 %v699_v7, %v698_v6  ;;  %v3174_v10 = vpop.f32.mrb[28].mxu0 }
 0x1b5   : > { %v668_v11 = vadd.f32 %v3174_v10, %v4160_v38  ;;  %v659_v12 = vpop.f32.mrb[29].mxu0 }
 0x1b6   : > { %v660_v13 = vadd.f32 %v4160_v38, %v659_v12  ;;  %v3175_v14 = vpop.f32.mrb[30].mxu0  ;;  %3216 = vmatprep.mubr.bf16.mxu1 %v718_v9 }
 0x1b7   : > { %v671_v15 = vadd.f32 %v3175_v14, %v4160_v38  ;;  %v662_v16 = vpop.f32.mrb[31].mxu0  ;;  %3217 = vmatmul.mubr.bf16.gmra.mrb[24].mxu1 %v719_v8  ;;  %v704_v18 = vmax.f32 %v668_v11, 0.0 }
 0x1b8   : > { %v663_v17 = vadd.f32 %v4160_v38, %v662_v16  ;;  %v702_v20 = vmax.f32 %v660_v13, 0.0 }
 0x1b9   : > { %v705_v19 = vmax.f32 %v671_v15, 0.0 }
 0x1ba   : > { %v703_v21 = vmax.f32 %v663_v17, 0.0 }
 0x1bb   : > { %v721_v22 = vpack.c.bf16 %v705_v19, %v704_v18 }
 0x1bc   : > { %v720_v23 = vpack.c.bf16 %v703_v21, %v702_v20 }
 0x1be   : > { %3220 = vmatprep.mubr.bf16.mxu1 %v720_v23 }
 0x1bf   : > { %3221 = vmatmul.mubr.bf16.gmra.mrb[28].mxu1 %v721_v22 }
 0x25a   : > { %v3194_v27 = vpop.f32.mrb[0].mxu1 }
 0x25b   : > { %v838_v28 = vadd.f32 %v3194_v27, %v4194_v26  ;;  %v829_v38 = vpop.f32.mrb[1].mxu1 }
 0x25c   : > { %v830_v29 = vadd.f32 %v4194_v26, %v829_v38  ;;  %v3195_v30 = vpop.f32.mrb[2].mxu1 }
 0x25d   : > { %v841_v31 = vadd.f32 %v3195_v30, %v4194_v26  ;;  %v832_v32 = vpop.f32.mrb[3].mxu1  ;;  %v958_v34 = vmax.f32 %v838_v28, 0.0 }
 0x25e   : > { %v833_v33 = vadd.f32 %v4194_v26, %v832_v32  ;;  %v956_v36 = vmax.f32 %v830_v29, 0.0 }
 0x25f   : > { %v959_v35 = vmax.f32 %v841_v31, 0.0 }
 0x260   : > { %v957_v37 = vmax.f32 %v833_v33, 0.0 }
 0x261   : > { %v989_v39 = vpack.c.bf16 %v959_v35, %v958_v34 }
 0x262   : > { %v988_v40 = vpack.c.bf16 %v957_v37, %v956_v36  ;;  %v3198_v41 = vpop.f32.mrb[4].mxu1 }
 0x263   : > { %v854_v42 = vadd.f32 %v3198_v41, %v4194_v26  ;;  %v845_v43 = vpop.f32.mrb[5].mxu1 }
 0x264   : > { %v846_v44 = vadd.f32 %v4194_v26, %v845_v43  ;;  %v3199_v45 = vpop.f32.mrb[6].mxu1  ;;  %3240 = vmatprep.mubr.bf16.mxu0 %v988_v40 }
 0x265   : > { %v857_v46 = vadd.f32 %v3199_v45, %v4194_v26  ;;  %v848_v47 = vpop.f32.mrb[7].mxu1  ;;  %3241 = vmatmul.mubr.bf16.vlgmr.msra.gmra.mrb[32].mxu0 %v989_v39  ;;  %v962_v49 = vmax.f32 %v854_v42, 0.0 }
 0x266   : > { %v849_v48 = vadd.f32 %v4194_v26, %v848_v47  ;;  %v960_v51 = vmax.f32 %v846_v44, 0.0 }
 0x267   : > { %v963_v50 = vmax.f32 %v857_v46, 0.0 }
 0x268   : > { %v961_v52 = vmax.f32 %v849_v48, 0.0 }
 0x269   : > { %v991_v53 = vpack.c.bf16 %v963_v50, %v962_v49 }
 0x26a   : > { %v990_v54 = vpack.c.bf16 %v961_v52, %v960_v51  ;;  %v3202_v55 = vpop.f32.mrb[8].mxu1 }
 0x26b   : > { %v870_v56 = vadd.f32 %v3202_v55, %v4194_v26  ;;  %v861_v57 = vpop.f32.mrb[9].mxu1 }
 0x26c   : > { %v862_v58 = vadd.f32 %v4194_v26, %v861_v57  ;;  %v3203_v59 = vpop.f32.mrb[10].mxu1  ;;  %3244 = vmatprep.mubr.bf16.mxu0 %v990_v54 }
 0x26d   : > { %v873_v60 = vadd.f32 %v3203_v59, %v4194_v26  ;;  %v864_v61 = vpop.f32.mrb[11].mxu1  ;;  %3245 = vmatmul.mubr.bf16.gmra.mrb[36].mxu0 %v991_v53  ;;  %v966_v63 = vmax.f32 %v870_v56, 0.0 }
 0x26e   : > { %v865_v62 = vadd.f32 %v4194_v26, %v864_v61  ;;  %v964_v1 = vmax.f32 %v862_v58, 0.0 }
 0x26f   : > { %v967_v0 = vmax.f32 %v873_v60, 0.0 }
 0x270   : > { %v965_v2 = vmax.f32 %v865_v62, 0.0 }
 0x271   : > { %v993_v3 = vpack.c.bf16 %v967_v0, %v966_v63 }
 0x272   : > { %v992_v4 = vpack.c.bf16 %v965_v2, %v964_v1  ;;  %v3206_v5 = vpop.f32.mrb[12].mxu1 }
 0x273   : > { %v886_v6 = vadd.f32 %v3206_v5, %v4194_v26  ;;  %v877_v7 = vpop.f32.mrb[13].mxu1 }
 0x274   : > { %v878_v8 = vadd.f32 %v4194_v26, %v877_v7  ;;  %v3207_v9 = vpop.f32.mrb[14].mxu1  ;;  %3248 = vmatprep.mubr.bf16.mxu0 %v992_v4 }
 0x275   : > { %v889_v10 = vadd.f32 %v3207_v9, %v4194_v26  ;;  %v880_v11 = vpop.f32.mrb[15].mxu1  ;;  %3249 = vmatmul.mubr.bf16.gmra.mrb[40].mxu0 %v993_v3  ;;  %v970_v13 = vmax.f32 %v886_v6, 0.0 }
 0x276   : > { %v881_v12 = vadd.f32 %v4194_v26, %v880_v11  ;;  %v968_v15 = vmax.f32 %v878_v8, 0.0 }
 0x277   : > { %v971_v14 = vmax.f32 %v889_v10, 0.0 }
 0x278   : > { %v969_v16 = vmax.f32 %v881_v12, 0.0  ;;  %v3609_v12 = vld [vmem:[#allocation8 + $0x4] ss:$8 sps:$4 sm:$0xff]  }
 0x279   : > { %v995_v17 = vpack.c.bf16 %v971_v14, %v970_v13  ;;  %1366 = vmatprep.mubr.bf16.mxu1 %v3609_v12  ;;  %v4228_v13 = vld [vmem:[#allocation7 + $0x2] ss:$0 sm:$0xff] }
 0x27a   : > { %v994_v18 = vpack.c.bf16 %v969_v16, %v968_v15  ;;  %v3210_v19 = vpop.f32.mrb[16].mxu1 }
 0x27b   : > { %v902_v20 = vadd.f32 %v3210_v19, %v4194_v26  ;;  %v893_v21 = vpop.f32.mrb[17].mxu1 }
 0x27c   : > { %v894_v22 = vadd.f32 %v4194_v26, %v893_v21  ;;  %v3211_v23 = vpop.f32.mrb[18].mxu1  ;;  %3252 = vmatprep.mubr.bf16.mxu0 %v994_v18 }
 0x27d   : > { %v905_v24 = vadd.f32 %v3211_v23, %v4194_v26  ;;  %v896_v25 = vpop.f32.mrb[19].mxu1  ;;  %3253 = vmatmul.mubr.bf16.gmra.mrb[44].mxu0 %v995_v17  ;;  %v974_v28 = vmax.f32 %v902_v20, 0.0 }
 0x27e   : > { %v897_v27 = vadd.f32 %v4194_v26, %v896_v25  ;;  %v972_v29 = vmax.f32 %v894_v22, 0.0 }
 0x27f   : > { %v975_v38 = vmax.f32 %v905_v24, 0.0 }
 0x280   : > { %v973_v30 = vmax.f32 %v897_v27, 0.0 }
 0x281   : > { %v997_v31 = vpack.c.bf16 %v975_v38, %v974_v28 }
 0x282   : > { %v996_v32 = vpack.c.bf16 %v973_v30, %v972_v29  ;;  %v3214_v33 = vpop.f32.mrb[20].mxu1 }
 0x283   : > { %v918_v34 = vadd.f32 %v3214_v33, %v4194_v26  ;;  %v909_v35 = vpop.f32.mrb[21].mxu1 }
 0x284   : > { %v910_v36 = vadd.f32 %v4194_v26, %v909_v35  ;;  %v3215_v37 = vpop.f32.mrb[22].mxu1  ;;  %3256 = vmatprep.mubr.bf16.mxu0 %v996_v32 }
 0x285   : > { %v921_v39 = vadd.f32 %v3215_v37, %v4194_v26  ;;  %v912_v40 = vpop.f32.mrb[23].mxu1  ;;  %3257 = vmatmul.mubr.bf16.gmra.mrb[48].mxu0 %v997_v31  ;;  %v978_v42 = vmax.f32 %v918_v34, 0.0 }
 0x286   : > { %v913_v41 = vadd.f32 %v4194_v26, %v912_v40  ;;  %v976_v44 = vmax.f32 %v910_v36, 0.0 }
 0x287   : > { %v979_v43 = vmax.f32 %v921_v39, 0.0 }
 0x288   : > { %v977_v45 = vmax.f32 %v913_v41, 0.0 }
 0x289   : > { %v999_v46 = vpack.c.bf16 %v979_v43, %v978_v42 }
 0x28a   : > { %v998_v47 = vpack.c.bf16 %v977_v45, %v976_v44  ;;  %v3218_v48 = vpop.f32.mrb[24].mxu1 }
 0x28b   : > { %v934_v49 = vadd.f32 %v3218_v48, %v4194_v26  ;;  %v925_v50 = vpop.f32.mrb[25].mxu1 }
 0x28c   : > { %v926_v51 = vadd.f32 %v4194_v26, %v925_v50  ;;  %v3219_v52 = vpop.f32.mrb[26].mxu1  ;;  %3260 = vmatprep.mubr.bf16.mxu0 %v998_v47 }
 0x28d   : > { %v937_v53 = vadd.f32 %v3219_v52, %v4194_v26  ;;  %v928_v54 = vpop.f32.mrb[27].mxu1  ;;  %3261 = vmatmul.mubr.bf16.gmra.mrb[52].mxu0 %v999_v46  ;;  %v982_v56 = vmax.f32 %v934_v49, 0.0 }
 0x28e   : > { %v929_v55 = vadd.f32 %v4194_v26, %v928_v54  ;;  %v980_v58 = vmax.f32 %v926_v51, 0.0 }
 0x28f   : > { %v983_v57 = vmax.f32 %v937_v53, 0.0 }
 0x290   : > { %v981_v59 = vmax.f32 %v929_v55, 0.0 }
 0x291   : > { %v1001_v60 = vpack.c.bf16 %v983_v57, %v982_v56 }
 0x292   : > { %v1000_v61 = vpack.c.bf16 %v981_v59, %v980_v58  ;;  %v3222_v62 = vpop.f32.mrb[28].mxu1 }
 0x293   : > { %v950_v63 = vadd.f32 %v3222_v62, %v4194_v26  ;;  %v941_v0 = vpop.f32.mrb[29].mxu1 }
 0x294   : > { %v942_v1 = vadd.f32 %v4194_v26, %v941_v0  ;;  %v3223_v2 = vpop.f32.mrb[30].mxu1  ;;  %3264 = vmatprep.mubr.bf16.mxu0 %v1000_v61 }
 0x295   : > { %v953_v3 = vadd.f32 %v3223_v2, %v4194_v26  ;;  %v944_v4 = vpop.f32.mrb[31].mxu1  ;;  %3265 = vmatmul.mubr.bf16.gmra.mrb[56].mxu0 %v1001_v60  ;;  %v986_v6 = vmax.f32 %v950_v63, 0.0 }
 0x296   : > { %v945_v5 = vadd.f32 %v4194_v26, %v944_v4  ;;  %v984_v8 = vmax.f32 %v942_v1, 0.0 }
 0x297   : > { %v987_v7 = vmax.f32 %v953_v3, 0.0 }
 0x298   : > { %v985_v9 = vmax.f32 %v945_v5, 0.0 }
 0x299   : > { %v1003_v10 = vpack.c.bf16 %v987_v7, %v986_v6 }
 0x29a   : > { %v1002_v11 = vpack.c.bf16 %v985_v9, %v984_v8 }
 0x29c   : > { %3268 = vmatprep.mubr.bf16.mxu0 %v1002_v11 }
 0x29d   : > { %3269 = vmatmul.mubr.bf16.gmra.mrb[60].mxu0 %v1003_v10 }
 0x338   : > { %v3242_v14 = vpop.f32.mrb[32].mxu0 }
 0x339   : > { %v1120_v15 = vadd.f32 %v3242_v14, %v4228_v13  ;;  %v1111_v16 = vpop.f32.mrb[33].mxu0 }
 0x33a   : > { %v1112_v17 = vadd.f32 %v4228_v13, %v1111_v16  ;;  %v3243_v18 = vpop.f32.mrb[34].mxu0 }
 0x33b   : > { %v1123_v26 = vadd.f32 %v3243_v18, %v4228_v13  ;;  %v1114_v19 = vpop.f32.mrb[35].mxu0  ;;  %v1240_v21 = vmax.f32 %v1120_v15, 0.0 }
 0x33c   : > { %v1115_v20 = vadd.f32 %v4228_v13, %v1114_v19  ;;  %v1238_v23 = vmax.f32 %v1112_v17, 0.0 }
 0x33d   : > { %v1241_v22 = vmax.f32 %v1123_v26, 0.0 }
 0x33e   : > { %v1239_v24 = vmax.f32 %v1115_v20, 0.0 }
 0x33f   : > { %v4234_v25 = vpack.c.bf16 %v1241_v22, %v1240_v21 }
 0x340   : > { %v4236_v27 = vpack.c.bf16 %v1239_v24, %v1238_v23  ;;  %v3246_v28 = vpop.f32.mrb[36].mxu0 }
 0x341   : > { %v1136_v38 = vadd.f32 %v3246_v28, %v4228_v13  ;;  %v1127_v29 = vpop.f32.mrb[37].mxu0 }
 0x342   : > { %v1128_v30 = vadd.f32 %v4228_v13, %v1127_v29  ;;  %v3247_v31 = vpop.f32.mrb[38].mxu0 }
 0x343   : > { %v1139_v32 = vadd.f32 %v3247_v31, %v4228_v13  ;;  %v1130_v33 = vpop.f32.mrb[39].mxu0  ;;  %v1244_v35 = vmax.f32 %v1136_v38, 0.0 }
 0x344   : > { %v1131_v34 = vadd.f32 %v4228_v13, %v1130_v33  ;;  %v1242_v37 = vmax.f32 %v1128_v30, 0.0 }
 0x345   : > { %v1245_v36 = vmax.f32 %v1139_v32, 0.0 }
 0x346   : > { %v1243_v39 = vmax.f32 %v1131_v34, 0.0 }
 0x347   : > { %v4242_v40 = vpack.c.bf16 %v1245_v36, %v1244_v35 }
 0x348   : > { %v4244_v41 = vpack.c.bf16 %v1243_v39, %v1242_v37  ;;  %v3250_v42 = vpop.f32.mrb[40].mxu0 }
 0x349   : > { %v1152_v43 = vadd.f32 %v3250_v42, %v4228_v13  ;;  %v1143_v44 = vpop.f32.mrb[41].mxu0 }
 0x34a   : > { %v1144_v45 = vadd.f32 %v4228_v13, %v1143_v44  ;;  %v3251_v46 = vpop.f32.mrb[42].mxu0 }
 0x34b   : > { %v1155_v47 = vadd.f32 %v3251_v46, %v4228_v13  ;;  %v1146_v48 = vpop.f32.mrb[43].mxu0  ;;  %v1248_v50 = vmax.f32 %v1152_v43, 0.0 }
 0x34c   : > { %v1147_v49 = vadd.f32 %v4228_v13, %v1146_v48  ;;  %v1246_v52 = vmax.f32 %v1144_v45, 0.0 }
 0x34d   : > { %v1249_v51 = vmax.f32 %v1155_v47, 0.0 }
 0x34e   : > { %v1247_v53 = vmax.f32 %v1147_v49, 0.0 }
 0x34f   : > { %v4250_v54 = vpack.c.bf16 %v1249_v51, %v1248_v50 }
 0x350   : > { %v4252_v55 = vpack.c.bf16 %v1247_v53, %v1246_v52  ;;  %v3254_v56 = vpop.f32.mrb[44].mxu0 }
 0x351   : > { %v1168_v57 = vadd.f32 %v3254_v56, %v4228_v13  ;;  %v1159_v58 = vpop.f32.mrb[45].mxu0 }
 0x352   : > { %v1160_v59 = vadd.f32 %v4228_v13, %v1159_v58  ;;  %v3255_v60 = vpop.f32.mrb[46].mxu0 }
 0x353   : > { %v1171_v61 = vadd.f32 %v3255_v60, %v4228_v13  ;;  %v1162_v62 = vpop.f32.mrb[47].mxu0  ;;  %v1252_v0 = vmax.f32 %v1168_v57, 0.0 }
 0x354   : > { %v1163_v63 = vadd.f32 %v4228_v13, %v1162_v62  ;;  %v1250_v2 = vmax.f32 %v1160_v59, 0.0 }
 0x355   : > { %v1253_v1 = vmax.f32 %v1171_v61, 0.0 }
 0x356   : > { %v1251_v3 = vmax.f32 %v1163_v63, 0.0 }
 0x357   : > { %v4258_v4 = vpack.c.bf16 %v1253_v1, %v1252_v0  ;;  %v3619_v1 = vld [vmem:[#allocation5 + $0xc0] sm:$0xff]  }
 0x358   : > { %v4260_v5 = vpack.c.bf16 %v1251_v3, %v1250_v2  ;;  %v3258_v6 = vpop.f32.mrb[48].mxu0  ;;  %v3607_v2 = vld [vmem:[#allocation8] ss:$8 sps:$4 sm:$0xff]  }
 0x359   : > { %v1184_v7 = vadd.f32 %v3258_v6, %v4228_v13  ;;  %v1175_v8 = vpop.f32.mrb[49].mxu0  ;;  %v3621_v3 = vld [vmem:[#allocation5 + $0xd0] sm:$0xff]   ;;  %v3612_v6 = vld [vmem:[#allocation8 + $0x10] ss:$8 sps:$4 sm:$0xff]  }
 0x35a   : > { %v1176_v9 = vadd.f32 %v4228_v13, %v1175_v8  ;;  %v3259_v10 = vpop.f32.mrb[50].mxu0  ;;  %v3615_v8 = vld [vmem:[#allocation8 + $0x20] ss:$8 sps:$4 sm:$0xff]  }
 0x35b   : > { %v1187_v11 = vadd.f32 %v3259_v10, %v4228_v13  ;;  %v1178_v12 = vpop.f32.mrb[51].mxu0  ;;  %v1256_v15 = vmax.f32 %v1184_v7, 0.0  ;;  %v3613_v7 = vld [vmem:[#allocation8 + $0x24] ss:$8 sps:$4 sm:$0xff]   ;;  %v3624_v10 = vld [vmem:[#allocation5 + $0xe8] sm:$0xff]  }
 0x35c   : > { %v1179_v14 = vadd.f32 %v4228_v13, %v1178_v12  ;;  %v1254_v17 = vmax.f32 %v1176_v9, 0.0  ;;  %v3618_v9 = vld [vmem:[#allocation8 + $0x30] ss:$8 sps:$4 sm:$0xff]  }
 0x35d   : > { %v1257_v16 = vmax.f32 %v1187_v11, 0.0  ;;  %v3625_v11 = vld [vmem:[#allocation5 + $0xf0] sm:$0xff]   ;;  %v3626_v12 = vld [vmem:[#allocation5 + $0xf8] sm:$0xff]  }
 0x35e   : > { %v1255_v18 = vmax.f32 %v1179_v14, 0.0  ;;  %v3627_v14 = vld [vmem:[#allocation5 + $0x100] sm:$0xff]  }
 0x35f   : > { %v1287_v26 = vpack.c.bf16 %v1257_v16, %v1256_v15  ;;  %v3628_v15 = vld [vmem:[#allocation5 + $0x108] sm:$0xff]   ;;  %3296 = vmatprep.subr.bf16.mxu0 %v3627_v14  ;;  %v3629_v16 = vld [vmem:[#allocation5 + $0x110] sm:$0xff]  }
 0x360   : > { %v1286_v19 = vpack.c.bf16 %v1255_v18, %v1254_v17  ;;  %v3262_v20 = vpop.f32.mrb[52].mxu0  ;;  %3297 = vmatpush3.bf16.msra.mxu0 %v3627_v14  ;;  %v3630_v17 = vld [vmem:[#allocation5 + $0x118] sm:$0xff]   ;;  %v3631_v18 = vld [vmem:[#allocation5 + $0x120] sm:$0xff]  }
 0x361   : > { %v1200_v21 = vadd.f32 %v3262_v20, %v4228_v13  ;;  %v1191_v22 = vpop.f32.mrb[53].mxu0  ;;  %3298 = vmatprep.subr.bf16.mxu0 %v3628_v15 }
 0x362   : > { %v1192_v23 = vadd.f32 %v4228_v13, %v1191_v22  ;;  %v3263_v24 = vpop.f32.mrb[54].mxu0  ;;  %2991 = vmatprep.subr.bf16.mxu1 %v1286_v19 }
 0x363   : > { %v1203_v28 = vadd.f32 %v3263_v24, %v4228_v13  ;;  %v1194_v38 = vpop.f32.mrb[55].mxu0  ;;  %2992 = vmatpush3.bf16.msra.mxu1 %v4236_v27  ;;  %v1260_v30 = vmax.f32 %v1200_v21, 0.0 }
 0x364   : > { %v1195_v29 = vadd.f32 %v4228_v13, %v1194_v38  ;;  %2993 = vmatprep.subr.bf16.mxu1 %v1287_v26  ;;  %v1258_v32 = vmax.f32 %v1192_v23, 0.0  ;;  %3299 = vmatpush3.bf16.msra.mxu0 %v3628_v15  ;;  %v3632_v26 = vld [vmem:[#allocation5 + $0x128] sm:$0xff]  }
 0x365   : > { %v1261_v31 = vmax.f32 %v1203_v28, 0.0  ;;  %3300 = vmatprep.subr.bf16.mxu0 %v3629_v16 }
 0x366   : > { %v1259_v33 = vmax.f32 %v1195_v29, 0.0 }
 0x367   : > { %v1289_v34 = vpack.c.bf16 %v1261_v31, %v1260_v30  ;;  %2994 = vmatpush3.bf16.msra.mxu1 %v4234_v25 }
 0x368   : > { %v1288_v35 = vpack.c.bf16 %v1259_v33, %v1258_v32  ;;  %v3266_v36 = vpop.f32.mrb[56].mxu0  ;;  %3301 = vmatpush3.bf16.msra.mxu0 %v3629_v16 }
 0x369   : > { %v1216_v37 = vadd.f32 %v3266_v36, %v4228_v13  ;;  %v1207_v39 = vpop.f32.mrb[57].mxu0  ;;  %3302 = vmatprep.subr.bf16.mxu0 %v3630_v17 }
 0x36a   : > { %v1208_v42 = vadd.f32 %v4228_v13, %v1207_v39  ;;  %v3267_v43 = vpop.f32.mrb[58].mxu0  ;;  %2995 = vmatprep.subr.bf16.mxu1 %v1288_v35 }
 0x36b   : > { %v1219_v27 = vadd.f32 %v3267_v43, %v4228_v13  ;;  %v1210_v44 = vpop.f32.mrb[59].mxu0  ;;  %2996 = vmatpush3.bf16.msra.mxu1 %v4244_v41  ;;  %v1264_v46 = vmax.f32 %v1216_v37, 0.0 }
 0x36c   : > { %v1211_v45 = vadd.f32 %v4228_v13, %v1210_v44  ;;  %2997 = vmatprep.subr.bf16.mxu1 %v1289_v34  ;;  %v1262_v25 = vmax.f32 %v1208_v42, 0.0  ;;  %3303 = vmatpush3.bf16.msra.mxu0 %v3630_v17 }
 0x36d   : > { %v1265_v47 = vmax.f32 %v1219_v27, 0.0  ;;  %3304 = vmatprep.subr.bf16.mxu0 %v3631_v18 }
 0x36e   : > { %v1263_v48 = vmax.f32 %v1211_v45, 0.0 }
 0x36f   : > { %v1291_v49 = vpack.c.bf16 %v1265_v47, %v1264_v46  ;;  %2998 = vmatpush3.bf16.msra.mxu1 %v4242_v40 }
 0x370   : > { %v1290_v50 = vpack.c.bf16 %v1263_v48, %v1262_v25  ;;  %v3270_v51 = vpop.f32.mrb[60].mxu0  ;;  %3305 = vmatpush3.bf16.msra.mxu0 %v3631_v18 }
 0x371   : > { %v1232_v52 = vadd.f32 %v3270_v51, %v4228_v13  ;;  %v1223_v53 = vpop.f32.mrb[61].mxu0  ;;  %3306 = vmatprep.subr.bf16.mxu0 %v3632_v26  ;;  %v3634_v51 = vld [vmem:[#allocation5 + $0x138] sm:$0xff]  }
 0x372   : > { %v1224_v56 = vadd.f32 %v4228_v13, %v1223_v53  ;;  %v3271_v57 = vpop.f32.mrb[62].mxu0  ;;  %2999 = vmatprep.subr.bf16.mxu1 %v1290_v50  ;;  %v3633_v50 = vld [vmem:[#allocation5 + $0x130] sm:$0xff]   ;;  %v3636_v53 = vld [vmem:[#allocation5 + $0x148] sm:$0xff]  }
 0x373   : > { %v1235_v41 = vadd.f32 %v3271_v57, %v4228_v13  ;;  %v1226_v58 = vpop.f32.mrb[63].mxu0  ;;  %3000 = vmatpush3.bf16.msra.mxu1 %v4252_v55  ;;  %v1268_v60 = vmax.f32 %v1232_v52, 0.0  ;;  %v3610_v55 = vld [vmem:[#allocation8 + $0x14] ss:$8 sps:$4 sm:$0xff]   ;;  %v3638_v57 = vld [vmem:[#allocation5 + $0x158] sm:$0xff]  }
 0x374   : > { %v1227_v59 = vadd.f32 %v4228_v13, %v1226_v58  ;;  %3001 = vmatprep.subr.bf16.mxu1 %v1291_v49  ;;  %v1266_v40 = vmax.f32 %v1224_v56, 0.0  ;;  %v3620_v13 = vld [vmem:[#allocation5 + $0xc8] sm:$0xff]   ;;  %3307 = vmatpush3.bf16.msra.mxu0 %v3632_v26  ;;  %v3635_v52 = vld [vmem:[#allocation5 + $0x140] sm:$0xff]   ;;  %v3637_v56 = vld [vmem:[#allocation5 + $0x150] sm:$0xff]  }
 0x375   : > { %v1269_v61 = vmax.f32 %v1235_v41, 0.0  ;;  %3308 = vmatprep.subr.bf16.mxu0 %v3633_v50  ;;  %v3639_v41 = vld [vmem:[#allocation5 + $0x160] sm:$0xff]   ;;  %v3640_v58 = vld [vmem:[#allocation5 + $0x168] sm:$0xff]  }
 0x376   : > { %v1267_v62 = vmax.f32 %v1227_v59, 0.0  ;;  %v2831_v59 = vld [vmem:[#allocation7 + $0x3] ss:$0 sm:$0xff] }
 0x377   : > { %v1293_v63 = vpack.c.bf16 %v1269_v61, %v1268_v60  ;;  %3002 = vmatpush3.bf16.msra.mxu1 %v4250_v54  ;;  %v3622_v54 = vld [vmem:[#allocation5 + $0xd8] sm:$0xff]  }
 0x378   : > { %v1292_v0 = vpack.c.bf16 %v1267_v62, %v1266_v40  ;;  %3309 = vmatpush3.bf16.msra.mxu0 %v3633_v50 }
 0x379   : > { %3310 = vmatprep.subr.bf16.mxu0 %v3634_v51 }
 0x37a   : > { %3003 = vmatprep.subr.bf16.mxu1 %v1292_v0 }
 0x37b   : > { %3004 = vmatpush3.bf16.msra.mxu1 %v4260_v5  ;;  %v3623_v5 = vld [vmem:[#allocation5 + $0xe0] sm:$0xff]  }
 0x37c   : > { %3005 = vmatprep.subr.bf16.mxu1 %v1293_v63  ;;  %3311 = vmatpush3.bf16.msra.mxu0 %v3634_v51 }
 0x37f   : > { %3006 = vmatpush3.bf16.msra.mxu1 %v4258_v4  ;;  %v3616_v4 = vld [vmem:[#allocation8 + $0x34] ss:$8 sps:$4 sm:$0xff]  }
 0x380   : > { %3272 = vmatprep.subr.bf16.mxu1 %v3619_v1 }
 0x382   : > { %1367 = vmatmul.mubr.bf16.vlgmr.msra.gmra.mrb[32].mxu1 %v3607_v2 }
 0x383   : > { %1374 = vmatprep.mubr.bf16.mxu1 %v3610_v55  ;;  %3273 = vmatpush3.bf16.msra.mxu1 %v3619_v1 }
 0x384   : > { %3274 = vmatprep.subr.bf16.mxu1 %v3620_v13 }
 0x387   : > { %3275 = vmatpush3.bf16.msra.mxu1 %v3620_v13 }
 0x388   : > { %3276 = vmatprep.subr.bf16.mxu1 %v3621_v3 }
 0x38a   : > { %1375 = vmatmul.mubr.bf16.gmra.mrb[36].mxu1 %v3612_v6 }
 0x38b   : > { %1382 = vmatprep.mubr.bf16.mxu1 %v3613_v7  ;;  %3277 = vmatpush3.bf16.msra.mxu1 %v3621_v3 }
 0x38c   : > { %3278 = vmatprep.subr.bf16.mxu1 %v3622_v54 }
 0x38f   : > { %3279 = vmatpush3.bf16.msra.mxu1 %v3622_v54 }
 0x390   : > { %3280 = vmatprep.subr.bf16.mxu1 %v3623_v5 }
 0x392   : > { %1383 = vmatmul.mubr.bf16.gmra.mrb[40].mxu1 %v3615_v8 }
 0x393   : > { %1390 = vmatprep.mubr.bf16.mxu1 %v3616_v4  ;;  %3281 = vmatpush3.bf16.msra.mxu1 %v3623_v5 }
 0x394   : > { %3282 = vmatprep.subr.bf16.mxu1 %v3624_v10 }
 0x397   : > { %3283 = vmatpush3.bf16.msra.mxu1 %v3624_v10 }
 0x398   : > { %3284 = vmatprep.subr.bf16.mxu1 %v3625_v11 }
 0x39a   : > { %1391 = vmatmul.mubr.bf16.gmra.mrb[44].mxu1 %v3618_v9 }
 0x39b   : > { %3285 = vmatpush3.bf16.msra.mxu1 %v3625_v11 }
 0x39c   : > { %3286 = vmatprep.subr.bf16.mxu1 %v3626_v12 }
 0x39f   : > { %3287 = vmatpush3.bf16.msra.mxu1 %v3626_v12 }
 0x3a0   : > { %3320 = vmatprep.subr.bf16.mxu1 %v3635_v52 }
 0x455   : > { %v3007_v19 = vpop.f32.mrb[32].mxu1 }
 0x456   : > { %v3008_v20 = vpop.f32.mrb[33].mxu1 }
 0x457   : > { %v3009_v21 = vadd.f32 %v3008_v20, %v3007_v19  ;;  %v3010_v22 = vpop.f32.mrb[34].mxu1  ;;  %v3641_v20 = vld [vmem:[#allocation5 + $0x170] sm:$0xff]  }
 0x458   : > { %v3011_v23 = vpop.f32.mrb[35].mxu1 }
 0x459   : > { %v3012_v24 = vadd.f32 %v3011_v23, %v3010_v22  ;;  %v2840_v22 = vld [vmem:[#allocation7 + $0x4] ss:$0 sm:$0xff] }
 0x45b   : > { %v1399_v28 = vpack.c.bf16 %v3012_v24, %v3009_v21  ;;  %v3642_v21 = vld [vmem:[#allocation5 + $0x178] sm:$0xff]  }
 0x45d   : > { %v3013_v38 = vpop.f32.mrb[36].mxu1  ;;  %3288 = vmatprep.mubr.bf16.mxu1 %v1399_v28 }
 0x45e   : > { %v3014_v29 = vpop.f32.mrb[37].mxu1 }
 0x45f   : > { %v3015_v30 = vadd.f32 %v3014_v29, %v3013_v38  ;;  %v3016_v31 = vpop.f32.mrb[38].mxu1 }
 0x460   : > { %v3017_v32 = vpop.f32.mrb[39].mxu1 }
 0x461   : > { %v3018_v33 = vadd.f32 %v3017_v32, %v3016_v31 }
 0x463   : > { %v1400_v34 = vpack.c.bf16 %v3018_v33, %v3015_v30 }
 0x465   : > { %3289 = vmatmul.mubr.bf16.vlgmr.msra.gmra.mrb[48].mxu1 %v1400_v34  ;;  %v3019_v35 = vpop.f32.mrb[40].mxu1 }
 0x466   : > { %v3020_v36 = vpop.f32.mrb[41].mxu1  ;;  %3321 = vmatpush3.bf16.msra.mxu1 %v3635_v52 }
 0x467   : > { %v3021_v37 = vadd.f32 %v3020_v36, %v3019_v35  ;;  %v3022_v39 = vpop.f32.mrb[42].mxu1  ;;  %3322 = vmatprep.subr.bf16.mxu1 %v3636_v53 }
 0x468   : > { %v3023_v42 = vpop.f32.mrb[43].mxu1 }
 0x469   : > { %v3024_v43 = vadd.f32 %v3023_v42, %v3022_v39 }
 0x46a   : > { %3323 = vmatpush3.bf16.msra.mxu1 %v3636_v53 }
 0x46b   : > { %v1401_v27 = vpack.c.bf16 %v3024_v43, %v3021_v37  ;;  %3324 = vmatprep.subr.bf16.mxu1 %v3637_v56 }
 0x46d   : > { %v3025_v44 = vpop.f32.mrb[44].mxu1  ;;  %3292 = vmatprep.mubr.bf16.mxu1 %v1401_v27 }
 0x46e   : > { %v3026_v45 = vpop.f32.mrb[45].mxu1  ;;  %3325 = vmatpush3.bf16.msra.mxu1 %v3637_v56  ;;  %v3892_v56 = vmov 0.0  }
 0x46f   : > { %v3027_v46 = vadd.f32 %v3026_v45, %v3025_v44  ;;  %v3028_v47 = vpop.f32.mrb[46].mxu1  ;;  %3326 = vmatprep.subr.bf16.mxu1 %v3638_v57  ;;  %3376 = vmatprep.subr.bf16.mxu0 %v3892_v56 }
 0x470   : > { %v3029_v25 = vpop.f32.mrb[47].mxu1 }
 0x471   : > { %v3030_v48 = vadd.f32 %v3029_v25, %v3028_v47 }
 0x472   : > { %3327 = vmatpush3.bf16.msra.mxu1 %v3638_v57  ;;  %v2849_v57 = vld [vmem:[#allocation7 + $0x5] ss:$0 sm:$0xff] }
 0x473   : > { %v1402_v49 = vpack.c.bf16 %v3030_v48, %v3027_v46  ;;  %3328 = vmatprep.subr.bf16.mxu1 %v3639_v41 }
 0x475   : > { %3293 = vmatmul.mubr.bf16.gmra.mrb[52].mxu1 %v1402_v49 }
 0x476   : > { %3329 = vmatpush3.bf16.msra.mxu1 %v3639_v41 }
 0x477   : > { %3330 = vmatprep.subr.bf16.mxu1 %v3640_v58 }
 0x47a   : > { %3331 = vmatpush3.bf16.msra.mxu1 %v3640_v58 }
 0x47b   : > { %3332 = vmatprep.subr.bf16.mxu1 %v3641_v20 }
 0x47e   : > { %3333 = vmatpush3.bf16.msra.mxu1 %v3641_v20  ;;  %v3646_v20 = vld [vmem:[#allocation5 + $0x190] sm:$0xff]  }
 0x47f   : > { %3334 = vmatprep.subr.bf16.mxu1 %v3642_v21 }
 0x482   : > { %3335 = vmatpush3.bf16.msra.mxu1 %v3642_v21  ;;  %v3647_v21 = vld [vmem:[#allocation5 + $0x198] sm:$0xff]  }
 0x483   : > { %3344 = vmatprep.subr.bf16.mxu1 %v3892_v56 }
 0x538   : > { %v3290_v60 = vpop.f32.mrb[48].mxu1 }
 0x539   : > { %v1519_v61 = vadd.f32 %v3290_v60, %v2831_v59  ;;  %v1510_v40 = vpop.f32.mrb[49].mxu1 }
 0x53a   : > { %v1511_v62 = vadd.f32 %v2831_v59, %v1510_v40  ;;  %v3291_v63 = vpop.f32.mrb[50].mxu1 }
 0x53b   : > { %v1522_v0 = vadd.f32 %v3291_v63, %v2831_v59  ;;  %v1513_v1 = vpop.f32.mrb[51].mxu1  ;;  %v1543_v55 = vmax.f32 %v1519_v61, 0.0 }
 0x53c   : > { %v1514_v2 = vadd.f32 %v2831_v59, %v1513_v1  ;;  %v1541_v3 = vmax.f32 %v1511_v62, 0.0 }
 0x53d   : > { %v1544_v13 = vmax.f32 %v1522_v0, 0.0 }
 0x53e   : > { %v1542_v6 = vmax.f32 %v1514_v2, 0.0 }
 0x53f   : > { %v1550_v7 = vpack.c.bf16 %v1544_v13, %v1543_v55 }
 0x540   : > { %v1549_v54 = vpack.c.bf16 %v1542_v6, %v1541_v3 }
 0x542   : > { %3312 = vmatprep.mubr.bf16.mxu0 %v1549_v54 }
 0x543   : > { %3313 = vmatmul.mubr.bf16.vlgmr.msra.gmra.mrb[64].mxu0 %v1550_v7 }
 0x548   : > { %v3294_v5 = vpop.f32.mrb[52].mxu1 }
 0x549   : > { %v1535_v8 = vadd.f32 %v3294_v5, %v2831_v59  ;;  %v1526_v4 = vpop.f32.mrb[53].mxu1 }
 0x54a   : > { %v1527_v9 = vadd.f32 %v2831_v59, %v1526_v4  ;;  %v3295_v10 = vpop.f32.mrb[54].mxu1 }
 0x54b   : > { %v1538_v11 = vadd.f32 %v3295_v10, %v2831_v59  ;;  %v1529_v12 = vpop.f32.mrb[55].mxu1  ;;  %v1547_v15 = vmax.f32 %v1535_v8, 0.0 }
 0x54c   : > { %v1530_v14 = vadd.f32 %v2831_v59, %v1529_v12  ;;  %v1545_v17 = vmax.f32 %v1527_v9, 0.0 }
 0x54d   : > { %v1548_v16 = vmax.f32 %v1538_v11, 0.0 }
 0x54e   : > { %v1546_v18 = vmax.f32 %v1530_v14, 0.0 }
 0x54f   : > { %v1552_v26 = vpack.c.bf16 %v1548_v16, %v1547_v15 }
 0x550   : > { %v1551_v19 = vpack.c.bf16 %v1546_v18, %v1545_v17  ;;  %v3643_v18 = vld [vmem:[%s4414_s4] sm:$0xff]  }
 0x552   : > { %3316 = vmatprep.mubr.bf16.mxu0 %v1551_v19  ;;  %v3645_v19 = vld [vmem:[#allocation5 + $0x188] sm:$0xff]  }
 0x553   : > { %3317 = vmatmul.mubr.bf16.gmra.mrb[68].mxu0 %v1552_v26  ;;  %v3644_v26 = vld [vmem:[#allocation5 + $0x180] sm:$0xff]  }
 0x554   : > { %3392 = vmatprep.mubr.msk.bf16.mxu0 %vm3893_vm0, %v3892_v56 }
 0x616   : > { %v3314_v23 = vpop.f32.mrb[64].mxu0 }
 0x617   : > { %v1669_v24 = vadd.f32 %v3314_v23, %v2840_v22  ;;  %v1660_v28 = vpop.f32.mrb[65].mxu0  ;;  %v3649_v23 = vld [vmem:[#allocation5 + $0x1a8] sm:$0xff]  }
 0x618   : > { %v1661_v38 = vadd.f32 %v2840_v22, %v1660_v28  ;;  %v3315_v29 = vpop.f32.mrb[66].mxu0  ;;  %v3651_v28 = vld [vmem:[#allocation5 + $0x1b8] sm:$0xff]  }
 0x619   : > { %v1672_v30 = vadd.f32 %v3315_v29, %v2840_v22  ;;  %v1663_v31 = vpop.f32.mrb[67].mxu0  ;;  %v1693_v33 = vmax.f32 %v1669_v24, 0.0  ;;  %v3650_v24 = vld [vmem:[#allocation5 + $0x1b0] sm:$0xff]   ;;  %v3653_v29 = vld [vmem:[#allocation5 + $0x1c8] sm:$0xff]  }
 0x61a   : > { %v1664_v32 = vadd.f32 %v2840_v22, %v1663_v31  ;;  %v1691_v35 = vmax.f32 %v1661_v38, 0.0  ;;  %v3652_v38 = vld [vmem:[#allocation5 + $0x1c0] sm:$0xff]   ;;  %v3655_v31 = vld [vmem:[#allocation5 + $0x1d8] sm:$0xff]  }
 0x61b   : > { %v1694_v34 = vmax.f32 %v1672_v30, 0.0  ;;  %3377 = vmatpush3.bf16.msra.mxu0 %v3652_v38  ;;  %v3654_v30 = vld [vmem:[#allocation5 + $0x1d0] sm:$0xff]   ;;  %v3679_v38 = vld [vmem:[#allocation5 + $0x298] sm:$0xff]  }
 0x61c   : > { %v1692_v36 = vmax.f32 %v1664_v32, 0.0  ;;  %3378 = vmatprep.subr.bf16.mxu0 %v3892_v56  ;;  %v3656_v32 = vld [vmem:[#allocation5 + $0x1e0] sm:$0xff]  }
 0x61d   : > { %v1700_v37 = vpack.c.bf16 %v1694_v34, %v1693_v33  ;;  %v3657_v33 = vld [vmem:[#allocation5 + $0x1e8] sm:$0xff]  }
 0x61e   : > { %v1699_v39 = vpack.c.bf16 %v1692_v36, %v1691_v35 }
 0x61f   : > { %3379 = vmatpush3.bf16.msra.mxu0 %v3653_v29  ;;  %v3680_v29 = vld [vmem:[#allocation5 + $0x2a0] sm:$0xff]  }
 0x620   : > { %3336 = vmatprep.mubr.bf16.mxu1 %v1699_v39  ;;  %3380 = vmatprep.subr.bf16.mxu0 %v3892_v56 }
 0x621   : > { %3337 = vmatmul.mubr.bf16.vlgmr.msra.gmra.mrb[56].mxu1 %v1700_v37 }
 0x623   : > { %3381 = vmatpush3.bf16.msra.mxu0 %v3654_v30  ;;  %v3681_v30 = vld [vmem:[#allocation5 + $0x2a8] sm:$0xff]  }
 0x624   : > { %3382 = vmatprep.subr.bf16.mxu0 %v3892_v56 }
 0x626   : > { %v3318_v42 = vpop.f32.mrb[68].mxu0 }
 0x627   : > { %v1685_v43 = vadd.f32 %v3318_v42, %v2840_v22  ;;  %v1676_v27 = vpop.f32.mrb[69].mxu0  ;;  %3383 = vmatpush3.bf16.msra.mxu0 %v3655_v31  ;;  %v3658_v42 = vld [vmem:[#allocation5 + $0x1f0] sm:$0xff]  }
 0x628   : > { %v1677_v44 = vadd.f32 %v2840_v22, %v1676_v27  ;;  %v3319_v45 = vpop.f32.mrb[70].mxu0  ;;  %3384 = vmatprep.subr.bf16.mxu0 %v3892_v56  ;;  %v3660_v27 = vld [vmem:[#allocation5 + $0x200] sm:$0xff]  }
 0x629   : > { %v1688_v46 = vadd.f32 %v3319_v45, %v2840_v22  ;;  %v1679_v47 = vpop.f32.mrb[71].mxu0  ;;  %v1697_v48 = vmax.f32 %v1685_v43, 0.0  ;;  %v3659_v43 = vld [vmem:[#allocation5 + $0x1f8] sm:$0xff]   ;;  %v3662_v45 = vld [vmem:[#allocation5 + $0x210] sm:$0xff]  }
 0x62a   : > { %v1680_v25 = vadd.f32 %v2840_v22, %v1679_v47  ;;  %v1695_v50 = vmax.f32 %v1677_v44, 0.0  ;;  %v3648_v22 = vld [vmem:[#allocation5 + $0x1a0] sm:$0xff]   ;;  %v3661_v44 = vld [vmem:[#allocation5 + $0x208] sm:$0xff]  }
 0x62b   : > { %v1698_v49 = vmax.f32 %v1688_v46, 0.0  ;;  %3385 = vmatpush3.bf16.msra.mxu0 %v3656_v32  ;;  %v3663_v46 = vld [vmem:[#allocation5 + $0x218] sm:$0xff]   ;;  %v3664_v47 = vld [vmem:[#allocation5 + $0x220] sm:$0xff]  }
 0x62c   : > { %v1696_v51 = vmax.f32 %v1680_v25, 0.0  ;;  %3386 = vmatprep.subr.bf16.mxu0 %v3892_v56  ;;  %v3665_v25 = vld [vmem:[#allocation5 + $0x228] sm:$0xff]  }
 0x62d   : > { %v1702_v52 = vpack.c.bf16 %v1698_v49, %v1697_v48  ;;  %v2860_v48 = vld [vmem:[#allocation7 + $0x6] ss:$0 sm:$0xff] }
 0x62e   : > { %v1701_v53 = vpack.c.bf16 %v1696_v51, %v1695_v50 }
 0x62f   : > { %3387 = vmatpush3.bf16.msra.mxu0 %v3657_v33 }
 0x630   : > { %3340 = vmatprep.mubr.bf16.mxu1 %v1701_v53  ;;  %3388 = vmatprep.subr.bf16.mxu0 %v3892_v56 }
 0x631   : > { %3341 = vmatmul.mubr.bf16.gmra.mrb[60].mxu1 %v1702_v52 }
 0x632   : > { %3352 = vmatprep.mubr.msk.bf16.mxu1 %vm3893_vm0, %v3892_v56 }
 0x633   : > { %3389 = vmatpush3.bf16.msra.mxu0 %v3658_v42  ;;  %v3685_v42 = vld [vmem:[#allocation5 + $0x2c8] sm:$0xff]  }
 0x634   : > { %3390 = vmatprep.subr.bf16.mxu0 %v3892_v56 }
 0x637   : > { %3391 = vmatpush3.bf16.msra.mxu0 %v3659_v43  ;;  %v3686_v43 = vld [vmem:[#allocation5 + $0x2d0] sm:$0xff]  }
 0x638   : > { %3416 = vmatprep.subr.bf16.mxu0 %v3892_v56 }
 0x6f4   : > { %v3338_v41 = vpop.f32.mrb[56].mxu1 }
 0x6f5   : > { %v1819_v58 = vadd.f32 %v3338_v41, %v2849_v57  ;;  %v1810_v59 = vpop.f32.mrb[57].mxu1 }
 0x6f6   : > { %v1811_v60 = vadd.f32 %v2849_v57, %v1810_v59  ;;  %v3339_v61 = vpop.f32.mrb[58].mxu1 }
 0x6f7   : > { %v1822_v40 = vadd.f32 %v3339_v61, %v2849_v57  ;;  %v1813_v62 = vpop.f32.mrb[59].mxu1  ;;  %v1843_v0 = vmax.f32 %v1819_v58, 0.0  ;;  %v3667_v61 = vld [vmem:[#allocation5 + $0x238] sm:$0xff]  }
 0x6f8   : > { %v1814_v63 = vadd.f32 %v2849_v57, %v1813_v62  ;;  %v1841_v2 = vmax.f32 %v1811_v60, 0.0  ;;  %v3666_v60 = vld [vmem:[#allocation5 + $0x230] sm:$0xff]  }
 0x6f9   : > { %v1844_v1 = vmax.f32 %v1822_v40, 0.0  ;;  %v2869_v40 = vld [vmem:[#allocation7 + $0x7] ss:$0 sm:$0xff] }
 0x6fa   : > { %v1842_v55 = vmax.f32 %v1814_v63, 0.0 }
 0x6fb   : > { %v1852_v13 = vpack.c.bf16 %v1844_v1, %v1843_v0 }
 0x6fc   : > { %v1851_v3 = vpack.c.bf16 %v1842_v55, %v1841_v2 }
 0x6fe   : > { %3345 = vmatpush3.bf16.msra.mxu1 %v1851_v3 }
 0x6ff   : > { %3346 = vmatprep.subr.bf16.mxu1 %v3892_v56 }
 0x702   : > { %3347 = vmatpush3.bf16.msra.mxu1 %v1852_v13 }
 0x703   : > { %3348 = vmatprep.subr.bf16.mxu1 %v3892_v56 }
 0x704   : > { %v3342_v6 = vpop.f32.mrb[60].mxu1 }
 0x705   : > { %v1835_v7 = vadd.f32 %v3342_v6, %v2849_v57  ;;  %v1826_v54 = vpop.f32.mrb[61].mxu1 }
 0x706   : > { %v1827_v5 = vadd.f32 %v2849_v57, %v1826_v54  ;;  %v3343_v8 = vpop.f32.mrb[62].mxu1 }
 0x707   : > { %v1838_v4 = vadd.f32 %v3343_v8, %v2849_v57  ;;  %v1829_v9 = vpop.f32.mrb[63].mxu1  ;;  %v1847_v11 = vmax.f32 %v1835_v7, 0.0  ;;  %v2878_v7 = vld [vmem:[#allocation7 + $0x8] ss:$0 sm:$0xff] }
 0x708   : > { %v1830_v10 = vadd.f32 %v2849_v57, %v1829_v9  ;;  %v1845_v14 = vmax.f32 %v1827_v5, 0.0 }
 0x709   : > { %v1848_v12 = vmax.f32 %v1838_v4, 0.0 }
 0x70a   : > { %v1846_v15 = vmax.f32 %v1830_v10, 0.0 }
 0x70b   : > { %v1854_v16 = vpack.c.bf16 %v1848_v12, %v1847_v11 }
 0x70c   : > { %v1853_v17 = vpack.c.bf16 %v1846_v15, %v1845_v14  ;;  %v2256_v15 = vld [vmem:[%s4415_s5] sm:$0x3] }
 0x70e   : > { %3349 = vmatpush3.bf16.msra.mxu1 %v1853_v17  ;;  %v3669_v17 = vld [vmem:[#allocation5 + $0x248] sm:$0xff]  }
 0x70f   : > { %3350 = vmatprep.subr.bf16.mxu1 %v3892_v56 }
 0x712   : > { %3351 = vmatpush3.bf16.msra.mxu1 %v1854_v16  ;;  %v3668_v16 = vld [vmem:[#allocation5 + $0x240] sm:$0xff]  }
 0x713   : > { %3356 = vmatprep.subr.bf16.mxu1 %v3892_v56 }
 0x715   : > { %3353 = vmatmul.mubr.msk.bf16.vlgmr.msra.gmra.mrb[64].mxu1 %vm1860_vm1, %v3643_v18  ;;  %v3670_v18 = vld [vmem:[#allocation5 + $0x250] sm:$0xff]  }
 0x716   : > { %3357 = vmatpush3.bf16.msra.mxu1 %v3644_v26  ;;  %3372 = vmatprep.mubr.msk.bf16.mxu1 %vm3893_vm0, %v3892_v56  ;;  %v3671_v26 = vld [vmem:[#allocation5 + $0x258] sm:$0xff]  }
 0x717   : > { %3358 = vmatprep.subr.bf16.mxu1 %v3892_v56 }
 0x71a   : > { %3359 = vmatpush3.bf16.msra.mxu1 %v3645_v19  ;;  %v3672_v19 = vld [vmem:[#allocation5 + $0x260] sm:$0xff]  }
 0x71b   : > { %3360 = vmatprep.subr.bf16.mxu1 %v3892_v56 }
 0x71e   : > { %3361 = vmatpush3.bf16.msra.mxu1 %v3646_v20  ;;  %v3673_v20 = vld [vmem:[#allocation5 + $0x268] sm:$0xff]  }
 0x71f   : > { %3362 = vmatprep.subr.bf16.mxu1 %v3892_v56 }
 0x722   : > { %3363 = vmatpush3.bf16.msra.mxu1 %v3647_v21  ;;  %v3674_v21 = vld [vmem:[#allocation5 + $0x270] sm:$0xff]  }
 0x723   : > { %3364 = vmatprep.subr.bf16.mxu1 %v3892_v56 }
 0x726   : > { %3365 = vmatpush3.bf16.msra.mxu1 %v3648_v22  ;;  %v3675_v22 = vld [vmem:[#allocation5 + $0x278] sm:$0xff]  }
 0x727   : > { %3366 = vmatprep.subr.bf16.mxu1 %v3892_v56 }
 0x72a   : > { %3367 = vmatpush3.bf16.msra.mxu1 %v3649_v23  ;;  %v3676_v23 = vld [vmem:[#allocation5 + $0x280] sm:$0xff]  }
 0x72b   : > { %3368 = vmatprep.subr.bf16.mxu1 %v3892_v56 }
 0x72e   : > { %3369 = vmatpush3.bf16.msra.mxu1 %v3650_v24  ;;  %v3677_v24 = vld [vmem:[#allocation5 + $0x288] sm:$0xff]  }
 0x72f   : > { %3370 = vmatprep.subr.bf16.mxu1 %v3892_v56 }
 0x732   : > { %3371 = vmatpush3.bf16.msra.mxu1 %v3651_v28  ;;  %v3678_v28 = vld [vmem:[#allocation5 + $0x290] sm:$0xff]  }
 0x733   : > { %3396 = vmatprep.subr.bf16.mxu1 %v3892_v56 }
 0x7e8   : > { %v1898_v34 = vpop.f32.mrb[64].mxu1 }
 0x7e9   : > { %v3354_v35 = vpop.f32.mrb[65].mxu1 }
 0x7ea   : > { %v1901_v36 = vpop.f32.mrb[66].mxu1 }
 0x7eb   : > { %v1905_v37 = vpack.c.bf16 %v1901_v36, %v1898_v34  ;;  %v3355_v39 = vpop.f32.mrb[67].mxu1  ;;  %v3682_v36 = vld [vmem:[#allocation5 + $0x2b0] sm:$0xff]  }
 0x7ec   : > { %v3684_v39 = vld [vmem:[#allocation5 + $0x2c0] sm:$0xff]  }
 0x7ed   : > { %3373 = vmatmul.mubr.bf16.vlgmr.msra.gmra.mrb[68].mxu1 %v1905_v37  ;;  %v3683_v37 = vld [vmem:[#allocation5 + $0x2b8] sm:$0xff]  }
 0x7ee   : > { %3412 = vmatprep.mubr.msk.bf16.mxu1 %vm3893_vm0, %v3892_v56  ;;  %3397 = vmatpush3.bf16.msra.mxu1 %v3660_v27  ;;  %v3687_v27 = vld [vmem:[#allocation5 + $0x2d8] sm:$0xff]  }
 0x7ef   : > { %3398 = vmatprep.subr.bf16.mxu1 %v3892_v56 }
 0x7f2   : > { %3399 = vmatpush3.bf16.msra.mxu1 %v3661_v44  ;;  %v3688_v44 = vld [vmem:[#allocation5 + $0x2e0] sm:$0xff]  }
 0x7f3   : > { %3400 = vmatprep.subr.bf16.mxu1 %v3892_v56 }
 0x7f6   : > { %3401 = vmatpush3.bf16.msra.mxu1 %v3662_v45  ;;  %v3689_v45 = vld [vmem:[#allocation5 + $0x2e8] sm:$0xff]  }
 0x7f7   : > { %3402 = vmatprep.subr.bf16.mxu1 %v3892_v56 }
 0x7fa   : > { %3403 = vmatpush3.bf16.msra.mxu1 %v3663_v46  ;;  %v2888_v46 = vld [vmem:[#allocation7 + $0x9] ss:$0 sm:$0xff] }
 0x7fb   : > { %3404 = vmatprep.subr.bf16.mxu1 %v3892_v56 }
 0x7fe   : > { %3405 = vmatpush3.bf16.msra.mxu1 %v3664_v47 }
 0x7ff   : > { %3406 = vmatprep.subr.bf16.mxu1 %v3892_v56 }
 0x802   : > { %3407 = vmatpush3.bf16.msra.mxu1 %v3665_v25 }
 0x803   : > { %3408 = vmatprep.subr.bf16.mxu1 %v3892_v56 }
 0x806   : > { %3409 = vmatpush3.bf16.msra.mxu1 %v3666_v60 }
 0x807   : > { %3410 = vmatprep.subr.bf16.mxu1 %v3892_v56 }
 0x80a   : > { %3411 = vmatpush3.bf16.msra.mxu1 %v3667_v61 }
 0x80b   : > { %3442 = vmatprep.subr.bf16.mxu1 %v3892_v56 }
 0x8c0   : > { %v2013_v49 = vpop.f32.mrb[68].mxu1 }
 0x8c1   : > { %v2014_v50 = vadd.f32 %v2860_v48, %v2013_v49  ;;  %v3374_v51 = vpop.f32.mrb[69].mxu1 }
 0x8c2   : > { %v2016_v52 = vpop.f32.mrb[70].mxu1 }
 0x8c3   : > { %v2017_v53 = vadd.f32 %v2860_v48, %v2016_v52  ;;  %v3375_v57 = vpop.f32.mrb[71].mxu1  ;;  %v2020_v41 = vmax.f32 %v2014_v50, 0.0 }
 0x8c4   : > { %v3691_v57 = vld [vmem:[#allocation5 + $0x2f8] sm:$0xff]  }
 0x8c5   : > { %v2021_v58 = vmax.f32 %v2017_v53, 0.0  ;;  %v3690_v53 = vld [vmem:[#allocation5 + $0x2f0] sm:$0xff]  }
 0x8c7   : > { %v2022_v59 = vpack.c.bf16 %v2021_v58, %v2020_v41  ;;  %v2897_v41 = vld [vmem:[#allocation7 + $0xa] ss:$0 sm:$0xff] }
 0x8c9   : > { %3393 = vmatmul.mubr.bf16.vlgmr.msra.gmra.mrb[72].mxu0 %v2022_v59 }
 0x8ca   : > { %3418 = vmatprep.mubr.msk.bf16.mxu0 %vm3893_vm0, %v3892_v56 }
 0x99c   : > { %v2130_v62 = vpop.f32.mrb[72].mxu0 }
 0x99d   : > { %v2131_v63 = vadd.f32 %v2869_v40, %v2130_v62  ;;  %v3394_v0 = vpop.f32.mrb[73].mxu0 }
 0x99e   : > { %v2133_v1 = vpop.f32.mrb[74].mxu0  ;;  %v2906_v0 = vld [vmem:[#allocation7 + $0xb] ss:$0 sm:$0xff] }
 0x99f   : > { %v2134_v2 = vadd.f32 %v2869_v40, %v2133_v1  ;;  %v3395_v55 = vpop.f32.mrb[75].mxu0  ;;  %v2137_v13 = vmax.f32 %v2131_v63, 0.0 }
 0x9a1   : > { %v2138_v3 = vmax.f32 %v2134_v2, 0.0 }
 0x9a3   : > { %v2139_v6 = vpack.c.bf16 %v2138_v3, %v2137_v13 }
 0x9a5   : > { %3413 = vmatmul.mubr.bf16.vlgmr.msra.gmra.mrb[72].mxu1 %v2139_v6 }
 0x9a6   : > { %3458 = vmatprep.mubr.msk.bf16.mxu1 %vm3893_vm0, %v3892_v56  ;;  %3443 = vmatpush3.bf16.msra.mxu1 %v3676_v23 }
 0x9a7   : > { %3444 = vmatprep.subr.bf16.mxu1 %v3892_v56 }
 0x9aa   : > { %3445 = vmatpush3.bf16.msra.mxu1 %v3677_v24 }
 0x9ab   : > { %3446 = vmatprep.subr.bf16.mxu1 %v3892_v56 }
 0x9ae   : > { %3447 = vmatpush3.bf16.msra.mxu1 %v3678_v28 }
 0x9af   : > { %3448 = vmatprep.subr.bf16.mxu1 %v3892_v56 }
 0x9b2   : > { %3449 = vmatpush3.bf16.msra.mxu1 %v3679_v38 }
 0x9b3   : > { %3450 = vmatprep.subr.bf16.mxu1 %v3892_v56 }
 0x9b6   : > { %3451 = vmatpush3.bf16.msra.mxu1 %v3680_v29 }
 0x9b7   : > { %3452 = vmatprep.subr.bf16.mxu1 %v3892_v56 }
 0x9ba   : > { %3453 = vmatpush3.bf16.msra.mxu1 %v3681_v30 }
 0x9bb   : > { %3454 = vmatprep.subr.bf16.mxu1 %v3892_v56 }
 0x9be   : > { %3455 = vmatpush3.bf16.msra.mxu1 %v3682_v36 }
 0x9bf   : > { %3456 = vmatprep.subr.bf16.mxu1 %v3892_v56 }
 0x9c2   : > { %3457 = vmatpush3.bf16.msra.mxu1 %v3683_v37 }
 0xa78   : > { %v2247_v54 = vpop.f32.mrb[72].mxu1 }
 0xa79   : > { %v2248_v5 = vadd.f32 %v2878_v7, %v2247_v54  ;;  %v3414_v8 = vpop.f32.mrb[73].mxu1 }
 0xa7a   : > { %v2250_v4 = vpop.f32.mrb[74].mxu1 }
 0xa7b   : > { %v2251_v9 = vadd.f32 %v2878_v7, %v2250_v4  ;;  %v3415_v10 = vpop.f32.mrb[75].mxu1  ;;  %v2254_v11 = vmax.f32 %v2248_v5, 0.0 }
 0xa7d   : > { %v2255_v12 = vmax.f32 %v2251_v9, 0.0 }
 0xa7f   : > { %v2257_v14 = vpack.c.bf16 %v2255_v12, %v2254_v11 }
 0xa81   : > { %3417 = vmatpush3.bf16.msra.mxu0 %v2257_v14 }
 0xa82   : > { %3422 = vmatprep.subr.bf16.mxu0 %v3892_v56 }
 0xa84   : > { %3419 = vmatmul.mubr.msk.bf16.vlgmr.msra.gmra.mrb[76].mxu0 %vm2258_vm2, %v2256_v15 }
 0xa85   : > { %3423 = vmatpush3.bf16.msra.mxu0 %v3668_v16  ;;  %3438 = vmatprep.mubr.msk.bf16.mxu0 %vm3893_vm0, %v3892_v56 }
 0xa86   : > { %3424 = vmatprep.subr.bf16.mxu0 %v3892_v56 }
 0xa89   : > { %3425 = vmatpush3.bf16.msra.mxu0 %v3669_v17 }
 0xa8a   : > { %3426 = vmatprep.subr.bf16.mxu0 %v3892_v56 }
 0xa8d   : > { %3427 = vmatpush3.bf16.msra.mxu0 %v3670_v18 }
 0xa8e   : > { %3428 = vmatprep.subr.bf16.mxu0 %v3892_v56 }
 0xa91   : > { %3429 = vmatpush3.bf16.msra.mxu0 %v3671_v26 }
 0xa92   : > { %3430 = vmatprep.subr.bf16.mxu0 %v3892_v56 }
 0xa95   : > { %3431 = vmatpush3.bf16.msra.mxu0 %v3672_v19 }
 0xa96   : > { %3432 = vmatprep.subr.bf16.mxu0 %v3892_v56 }
 0xa99   : > { %3433 = vmatpush3.bf16.msra.mxu0 %v3673_v20 }
 0xa9a   : > { %3434 = vmatprep.subr.bf16.mxu0 %v3892_v56 }
 0xa9d   : > { %3435 = vmatpush3.bf16.msra.mxu0 %v3674_v21 }
 0xa9e   : > { %3436 = vmatprep.subr.bf16.mxu0 %v3892_v56 }
 0xaa1   : > { %3437 = vmatpush3.bf16.msra.mxu0 %v3675_v22 }
 0xaa2   : > { %3462 = vmatprep.subr.bf16.mxu0 %v3892_v56 }
 0xb57   : > { %v2296_v31 = vpop.f32.mrb[76].mxu0 }
 0xb58   : > { %v2302_v32 = vpack.c.bf16 %v2296_v31, %v2296_v31  ;;  %v3420_v33 = vpop.f32.mrb[77].mxu0 }
 0xb59   : > { %v2299_v34 = vpop.f32.mrb[78].mxu0 }
 0xb5a   : > { %3439 = vmatmul.mubr.bf16.vlgmr.msra.gmra.mrb[80].mxu0 %v2302_v32  ;;  %v3421_v35 = vpop.f32.mrb[79].mxu0 }
 0xb5b   : > { %3478 = vmatprep.mubr.msk.bf16.mxu0 %vm3893_vm0, %v3892_v56  ;;  %3463 = vmatpush3.bf16.msra.mxu0 %v3684_v39 }
 0xb5c   : > { %3464 = vmatprep.subr.bf16.mxu0 %v3892_v56 }
 0xb5f   : > { %3465 = vmatpush3.bf16.msra.mxu0 %v3685_v42 }
 0xb60   : > { %3466 = vmatprep.subr.bf16.mxu0 %v3892_v56 }
 0xb63   : > { %3467 = vmatpush3.bf16.msra.mxu0 %v3686_v43 }
 0xb64   : > { %3468 = vmatprep.subr.bf16.mxu0 %v3892_v56 }
 0xb67   : > { %3469 = vmatpush3.bf16.msra.mxu0 %v3687_v27 }
 0xb68   : > { %3470 = vmatprep.subr.bf16.mxu0 %v3892_v56 }
 0xb6b   : > { %3471 = vmatpush3.bf16.msra.mxu0 %v3688_v44 }
 0xb6c   : > { %3472 = vmatprep.subr.bf16.mxu0 %v3892_v56 }
 0xb6f   : > { %3473 = vmatpush3.bf16.msra.mxu0 %v3689_v45 }
 0xb70   : > { %3474 = vmatprep.subr.bf16.mxu0 %v3892_v56 }
 0xb73   : > { %3475 = vmatpush3.bf16.msra.mxu0 %v3690_v53 }
 0xb74   : > { %3476 = vmatprep.subr.bf16.mxu0 %v3892_v56 }
 0xb77   : > { %3477 = vmatpush3.bf16.msra.mxu0 %v3691_v57 }
 0xc2d   : > { %v2410_v47 = vpop.f32.mrb[80].mxu0 }
 0xc2e   : > { %v2411_v25 = vadd.f32 %v2888_v46, %v2410_v47  ;;  %v3440_v48 = vpop.f32.mrb[81].mxu0 }
 0xc2f   : > { %v2413_v49 = vpop.f32.mrb[82].mxu0 }
 0xc30   : > { %v2416_v50 = vmax.f32 %v2411_v25, 0.0  ;;  %v3441_v51 = vpop.f32.mrb[83].mxu0 }
 0xc32   : > { %v2417_v52 = vpack.c.bf16 %v2416_v50, %v2416_v50 }
 0xc34   : > { %3459 = vmatmul.mubr.bf16.vlgmr.msra.gmra.mrb[76].mxu1 %v2417_v52 }
 0xd07   : > { %v2525_v58 = vpop.f32.mrb[76].mxu1 }
 0xd08   : > { %v2526_v59 = vadd.f32 %v2897_v41, %v2525_v58  ;;  %v3460_v60 = vpop.f32.mrb[77].mxu1 }
 0xd09   : > { %v2528_v61 = vpop.f32.mrb[78].mxu1 }
 0xd0a   : > { %v2531_v40 = vmax.f32 %v2526_v59, 0.0  ;;  %v3461_v62 = vpop.f32.mrb[79].mxu1 }
 0xd0c   : > { %v2532_v63 = vpack.c.bf16 %v2531_v40, %v2531_v40 }
 0xd0e   : > { %3479 = vmatmul.mubr.bf16.vlgmr.msra.gmra.mrb[84].mxu0 %v2532_v63 }
 0xde1   : > { %v2640_v1 = vpop.f32.mrb[84].mxu0 }
 0xde2   : > { %v2641_v2 = vadd.f32 %v2906_v0, %v2640_v1  ;;  %v3480_v55 = vpop.f32.mrb[85].mxu0 }
 0xde3   : > { %v2643_v13 = vpop.f32.mrb[86].mxu0 }
 0xde4   : > { %v2646_v56 = vmax.f32 %v2641_v2, 0.0  ;;  %v3481_v3 = vpop.f32.mrb[87].mxu0 }
 0xde6   : > { %v2648_v6 = vsel %vm2647_vm3, %v2646_v56, 0.0 }
 0xde7   : > { %v2649_v7 = vrot.slane %v2648_v6, 4 }
 0xde9   : > { %v2650_v54 = vadd.f32 %v2649_v7, %v2648_v6 }
 0xdeb   : > { %v2651_v5 = vrot.slane %v2650_v54, 2 }
 0xded   : > { %v2652_v8 = vadd.f32 %v2651_v5, %v2650_v54 }
 0xdef   : > { %v2653_v4 = vrot.slane %v2652_v8, 1 }
 0xdf1   : > { %v2654_v9 = vadd.f32 %v2653_v4, %v2652_v8 }
 0xdf3   : > { %v2656_v10 = vmul.f32 0.25, %v2654_v9 }
 0xdf5   : > { %2657 = vst [vmem:[%s312_s20] sm:$0x1] %v2656_v10 }
 0xdf6   : > { %3819 = shalt.err (!%p3816_p4)
}
 0xdf7   : > { %s3820_s15 = scalar_lea.hbm %s4366_s26, 16  ;;  %s3824_s7 = scalar_lea.hbm %s4416_s6, 32 }
 0xdf8   : > { %p3821_p9 = scmp.ne.s32.totalorder %s4366_s26, %s3820_s15  ;;  %p3825_p8 = scmp.lt.u32.totalorder %s4366_s26, %s4416_s6 }
 0xdf9   : > { %p3826_p13 = scmp.lt.u32.totalorder %s3824_s7, %s3820_s15  ;;  %p3828_p10 = scmp.lt.u32.totalorder %s3820_s15, %s4366_s26 }
 0xdfa   : > { %p3822_p0 = pnand %p3821_p9, %p4075_p5 }
 0xdfb   : > { %p3827_p6 = por %p3826_p13, %p3825_p8 }
 0xdfc   : > { %p3823_p11 = pneg %p3822_p0 }
 0xdfd   : > { %p3829_p3 = por %p3828_p10, %p3827_p6 }
 0xdff   : > { %p3830_p7 = pnand %p3829_p3, %p3823_p11 }
 0xe01   : > { %3833 = shalt.err (!%p3830_p7)
}
 0xe02   : > { %3496 = dma.vmem_to_hbm [thread:$0]  (%p4075_p5), %s4368_s18, 16, %s4366_s26, %s2659_s11  }
 0xe03 PF: > { %s2683_s20 = sand.u32 1, %s3868_s21   ;;  %p4438_p12 = scmp.ne.s32.totalorder %s4423_s28, 0 }
 0xe04   : > { %p4439_p1 = scmp.ge.s32.totalorder %s3880_s24, 2  ;;  %s2684_s10 = scalar_lea.sflag [#allocation4], %s2683_s20 }
 0xe06   : > { %p3513_p2 = pnand %p4439_p1, %p4438_p12 }
 0xe08   : > { %3863 = dma.done.wait (!%p3513_p2), %s2684_s10, 16  }
 0xe09   : > { %3865 = vsyncadd (!%p3513_p2), %s2684_s10, 4294967280  ;;  %p21_p4 = scmp.ge.s32.totalorder %s4061_s30, 4   ;;  %s4440_s21 = smov %s3872_s22 }
 0xe0a   : > { %s4441_s22 = smov %s3876_s23  ;;  %s4442_s23 = smov %s4071_s12 }
 0xe0b   : > { %s4443_s24 = smov %s4061_s30  ;;  %23 = sbr.rel (!%p21_p4) target bundleno = 7 (0x7), region = 123 }
 0xe12   :  { %2688 = vsyncpa [#allocation3], 1 }
 0xe13   :  { %2690 = vsyncpa [#allocation3 + $0x1], 1 }
 0xe14   :  { %2691 = vsyncpa [#allocation6], 1 }
 0xe15   :  { %2692 = vsyncpa [#allocation9], 1 }
 0xe16   :  { %2693 = vsyncpa [#allocation4], 1 }
 0xe17   :  { %2695 = vsyncpa [#allocation4 + $0x1], 1 }

</bundles_post_ra>
